<compile_context>
chip_gen: v6e
topology: v6e:2x2x1
jax: 0.10.0
libtpu: 0.0.40
codegen_flags: <defaults>
</compile_context>

<pallas_src>
import functools

import jax
import jax.numpy as jnp
from jax.experimental import pallas as pl
from jax.experimental.pallas import tpu as pltpu

STEM_C = 48          # EfficientNet-b4 stem output channels (real)
STEM_C_PAD = 64      # padded stem channels (zero-padded cols / zero head rows)
HEAD_C = 1792        # EfficientNet-b4 final 1x1 conv channels (input to _fc)
FC1, FC2 = 256, 64


def _round_up(x, m):
    return ((x + m - 1) // m) * m


def _silu(x_f32):
    # Single-transcendental SiLU: x*sigmoid(x) = x * 0.5 * (tanh(x/2) + 1).
    # bf16 tanh argument takes the bf16 EUP path on v6e/v7x; outer math stays f32.
    t = jnp.tanh((0.5 * x_f32).astype(jnp.bfloat16)).astype(jnp.float32)
    return x_f32 * (0.5 * (t + 1.0))


# ------------------------------ Pallas kernel ------------------------------

def _fused_forward_kernel(
    patches_ref,                        # [1, TILE_HW, KP]        bf16
    stem_w_ref,                         # [KP, STEM_C_PAD]        bf16
    stem_scale_ref, stem_shift_ref,     # [1, STEM_C_PAD]         f32
    head_w_ref,                         # [STEM_C_PAD, HEAD_C]    bf16
    head_scale_ref, head_shift_ref,     # [1, HEAD_C]             f32
    out_ref,                            # [1, 8, HEAD_C] f32  (partial pool sums,
                                        #  resident across the spatial grid axis)
    *, hw, tile_hw):
    t = pl.program_id(1)

    @pl.when(t == 0)
    def _init():
        out_ref[...] = jnp.zeros_like(out_ref)

    # --- stem 3x3 stride-2 conv (im2col matmul) + inference BN + SiLU (f32) ---
    patches = patches_ref[0]                                      # [TILE_HW, KP]
    y = jnp.dot(patches, stem_w_ref[...], preferred_element_type=jnp.float32)
    y = y * stem_scale_ref[...] + stem_shift_ref[...]
    y = _silu(y)

    # --- head 1x1 conv + BN + SiLU (padded stem channels are exactly zero) ---
    z = jnp.dot(y.astype(jnp.bfloat16), head_w_ref[...],
                preferred_element_type=jnp.float32)
    z = z * head_scale_ref[...] + head_shift_ref[...]
    z = _silu(z)                                                  # [TILE_HW, HEAD_C]

    # --- partial global-average-pool: same-sublane VPU adds, no MXU / XLU ----
    def accum(vals):
        out_ref[...] += vals.reshape(tile_hw // 8, 8, HEAD_C).sum(axis=0)[None]

    rem = hw % tile_hw                                            # static
    if rem == 0:
        accum(z)
    else:
        last = pl.num_programs(1) - 1

        @pl.when(t != last)
        def _full_tile():
            accum(z)

        @pl.when(t == last)
        def _remainder_tile():
            # Compile-time-constant mask: padded rows (SiLU(shift) != 0) must
            # not bias the pooled mean.
            keep = jax.lax.broadcasted_iota(jnp.int32, (tile_hw, 1), 0) < rem
            accum(jnp.where(keep, z, 0.0))


# ------------------------------ glue helpers -------------------------------

def _same_pad_stride2(x):
    # TF-style "same" padding for a 3x3 stride-2 conv (Conv2dStaticSamePadding), NHWC.
    _, h, w, _ = x.shape
    ho, wo = -(-h // 2), -(-w // 2)
    pad_h = max((ho - 1) * 2 + 3 - h, 0)
    pad_w = max((wo - 1) * 2 + 3 - w, 0)
    xp = jnp.pad(x, ((0, 0),
                     (pad_h // 2, pad_h - pad_h // 2),
                     (pad_w // 2, pad_w - pad_w // 2),
                     (0, 0)))
    return xp, ho, wo


def _im2col_3x3_s2(xp, ho, wo):
    # xp: [N, Hp, Wp, C] -> [N, Ho, Wo, 9*C]   (pure layout plumbing, XLA side)
    cols = []
    for i in range(3):
        for j in range(3):
            cols.append(xp[:, i:i + 2 * ho:2, j:j + 2 * wo:2, :])
    return jnp.concatenate(cols, axis=-1)


# ------------------------------- parameters --------------------------------

def init_params(key, cin=3):
    ks = jax.random.split(key, 12)
    f32, bf16 = jnp.float32, jnp.bfloat16
    kp = _round_up(9 * cin, 32)                     # 27 -> 32

    def w(k, shape, scale=0.05):
        return (scale * jax.random.normal(k, shape)).astype(f32)

    def bn(k, c):
        gamma = 1.0 + 0.1 * jax.random.normal(k, (c,))
        beta = 0.05 * jax.random.normal(jax.random.fold_in(k, 1), (c,))
        mean = 0.05 * jax.random.normal(jax.random.fold_in(k, 2), (c,))
        var = jnp.abs(jax.random.normal(jax.random.fold_in(k, 3), (c,))) + 1.0
        scale = gamma / jnp.sqrt(var + 1e-3)
        shift = beta - mean * scale
        return scale.astype(f32), shift.astype(f32)

    # stem conv: real [9*cin, 48], zero-padded to [kp, 64]
    stem_w = jnp.zeros((kp, STEM_C_PAD), f32).at[:9 * cin, :STEM_C].set(
        w(ks[0], (9 * cin, STEM_C)))
    s_scale, s_shift = bn(ks[1], STEM_C)
    stem_scale = jnp.zeros((1, STEM_C_PAD), f32).at[0, :STEM_C].set(s_scale)
    stem_shift = jnp.zeros((1, STEM_C_PAD), f32).at[0, :STEM_C].set(s_shift)

    # head 1x1 conv: real [48, 1792], padded stem-channel rows are zero
    head_w = jnp.zeros((STEM_C_PAD, HEAD_C), f32).at[:STEM_C, :].set(
        w(ks[2], (STEM_C, HEAD_C)))
    h_scale, h_shift = bn(ks[3], HEAD_C)

    # classifier: 1792 -> 256 -> ReLU -> (Dropout=id) -> 64 -> ReLU -> 3 -> 1
    # (runs as plain XLA on the pooled features; kept f32)
    w1, b1 = w(ks[4], (HEAD_C, FC1)), w(ks[5], (1, FC1))
    w2, b2 = w(ks[6], (FC1, FC2)), w(ks[7], (1, FC2))
    w3, b3 = w(ks[8], (FC2, 3)), w(ks[9], (1, 3))
    w4, b4 = w(ks[10], (3, 1)), w(ks[11], (1, 1))
    w34 = (w3 @ w4).T                               # [1, FC2] (no nonlinearity between)
    b34 = b3 @ w4 + b4                              # [1, 1]

    return {
        "stem_w": stem_w.astype(bf16),
        "stem_scale": stem_scale, "stem_shift": stem_shift,
        "head_w": head_w.astype(bf16),
        "head_scale": h_scale.reshape(1, HEAD_C),
        "head_shift": h_shift.reshape(1, HEAD_C),
        "fc_w1": w1, "fc_b1": b1,
        "fc_w2": w2, "fc_b2": b2,
        "fc_w34": w34, "fc_b34": b34,
    }


# ------------------------------ forward pass --------------------------------

def automorph_forward(params, x_nchw, tile_hw=None):
    # NCHW -> NHWC, bf16 immediately: halves the XLA-side patch-tensor traffic.
    x = jnp.transpose(x_nchw, (0, 2, 3, 1)).astype(jnp.bfloat16)
    n, _, _, cin = x.shape

    xp, ho, wo = _same_pad_stride2(x)
    hw = ho * wo
    patches = _im2col_3x3_s2(xp, ho, wo).reshape(n, hw, 9 * cin)

    kp = params["stem_w"].shape[0]
    assert 9 * cin <= kp, "input channels exceed padded stem K"

    if tile_hw is None:
        # 1024 rows: ~7 MiB f32 z-tile + temporaries, well inside the 48 MiB
        # scoped-VMEM budget below on v5e/v6e/v7x; 4x fewer grid steps than 256.
        tile_hw = min(1024, _round_up(hw, 16))
    tile_hw = _round_up(tile_hw, 16)                # multiple of 8 (sublane groups)
    hw_pad = _round_up(hw, tile_hw)

    patches = jnp.pad(patches, ((0, 0), (0, hw_pad - hw), (0, kp - 9 * cin)))

    grid = (n, hw_pad // tile_hw)
    const = lambda i, j: (0, 0)                     # resident weights, DMA'd once

    weight_args = (
        params["stem_w"], params["stem_scale"], params["stem_shift"],
        params["head_w"], params["head_scale"], params["head_shift"],
    )
    in_specs = [pl.BlockSpec((1, tile_hw, kp), lambda i, j: (i, j, 0))]
    in_specs += [pl.BlockSpec(a.shape, const) for a in weight_args]

    flops = 2 * n * hw_pad * (kp * STEM_C_PAD + STEM_C_PAD * HEAD_C)
    transcendentals = n * hw_pad * (STEM_C_PAD + HEAD_C)      # one tanh per SiLU elem
    bytes_accessed = int(patches.size * patches.dtype.itemsize
                         + sum(a.size * a.dtype.itemsize for a in weight_args)
                         + n * 8 * HEAD_C * 4)

    pooled = pl.pallas_call(
        functools.partial(_fused_forward_kernel, hw=hw, tile_hw=tile_hw),
        out_shape=jax.ShapeDtypeStruct((n, 8, HEAD_C), jnp.float32),
        grid=grid,
        in_specs=in_specs,
        out_specs=pl.BlockSpec((1, 8, HEAD_C), lambda i, j: (i, 0, 0)),
        compiler_params=pltpu.CompilerParams(
            dimension_semantics=("parallel", "arbitrary"),
            vmem_limit_bytes=48 * 1024 * 1024),
        cost_estimate=pl.CostEstimate(
            flops=flops, transcendentals=transcendentals,
            bytes_accessed=bytes_accessed),
    )(patches, *weight_args)

    # 8->1 sublane reduce + mean, then the tiny classifier MLP batched over N
    # in plain XLA (Dropout = identity in eval; Linear(64,3)+Linear(3,1) folded).
    feats = pooled.sum(axis=1) * (1.0 / hw)                       # [N, HEAD_C] f32
    h = jnp.maximum(feats @ params["fc_w1"] + params["fc_b1"], 0.0)
    h = jnp.maximum(h @ params["fc_w2"] + params["fc_b2"], 0.0)
    return jnp.sum(h * params["fc_w34"], axis=-1, keepdims=True) + params["fc_b34"]


# --------------------------- pure-JAX reference -----------------------------

def _reference_forward(params, x_nchw):
    x = jnp.transpose(x_nchw, (0, 2, 3, 1)).astype(jnp.float32)
    n, _, _, cin = x.shape
    xp, ho, wo = _same_pad_stride2(x)
    p = _im2col_3x3_s2(xp, ho, wo).reshape(n, ho * wo, 9 * cin)
    kp = params["stem_w"].shape[0]
    p = jnp.pad(p, ((0, 0), (0, 0), (0, kp - 9 * cin)))
    y = p @ params["stem_w"].astype(jnp.float32)
    y = y * params["stem_scale"] + params["stem_shift"]
    y = y * jax.nn.sigmoid(y)
    z = y @ params["head_w"].astype(jnp.float32)
    z = z * params["head_scale"] + params["head_shift"]
    z = z * jax.nn.sigmoid(z)
    f = jnp.mean(z, axis=1)
    h = jnp.maximum(f @ params["fc_w1"] + params["fc_b1"], 0.0)
    h = jnp.maximum(h @ params["fc_w2"] + params["fc_b2"], 0.0)
    return jnp.sum(h * params["fc_w34"], axis=-1, keepdims=True) + params["fc_b34"]


# ---------------------------------- main ------------------------------------

if __name__ == "__main__":
    x = jax.random.normal(jax.random.PRNGKey(0), (2, 3, 16, 16), dtype=jnp.float32)
    params = init_params(jax.random.PRNGKey(42))
    y_ref = _reference_forward(params, x)

    # tile_hw=32: two full tiles per sample (exercises multi-step accumulation);
    # tile_hw=48: remainder tile (exercises the static valid-row pooling mask).
    # Production default would be 1024.
    for thw in (32, 48):
        fwd = jax.jit(functools.partial(automorph_forward, tile_hw=thw))
        y = jax.block_until_ready(fwd(params, x))
        assert y.shape == (2, 1), y.shape
        assert bool(jnp.all(jnp.isfinite(y)))
        err = float(jnp.max(jnp.abs(y - y_ref)) / (jnp.max(jnp.abs(y_ref)) + 1e-6))
        assert err < 0.05, f"tile_hw={thw}: mismatch vs reference, rel-to-max {err:.4f}"

    print("KERNEL_OK")
</pallas_src>

<mosaic_0001>
module attributes {stable_mosaic.version = 11 : i64} {
  func.func @_fused_forward_kernel(%arg0: i32, %arg1: i32, %arg2: memref<1x32x32xbf16, #tpu.memory_space<vmem>>, %arg3: memref<32x64xbf16, #tpu.memory_space<vmem>>, %arg4: memref<1x64xf32, #tpu.memory_space<vmem>>, %arg5: memref<1x64xf32, #tpu.memory_space<vmem>>, %arg6: memref<64x1792xbf16, #tpu.memory_space<vmem>>, %arg7: memref<1x1792xf32, #tpu.memory_space<vmem>>, %arg8: memref<1x1792xf32, #tpu.memory_space<vmem>>, %arg9: memref<1x8x1792xf32, #tpu.memory_space<vmem>>) attributes {dimension_semantics = [#tpu.dimension_semantics<parallel>, #tpu.dimension_semantics<arbitrary>], iteration_bounds = array<i64: 2, 2>, scalar_prefetch = 0 : i64, scratch_operands = 0 : i64, tpu.core_type = #tpu.core_type<tc>, window_params = [{transform_indices = @transform_0, window_bounds = array<i64: 1, 32, 32>}, {pipeline_mode = #tpu.pipeline_mode<synchronous>, transform_indices = @transform_1, window_bounds = array<i64: 32, 64>}, {pipeline_mode = #tpu.pipeline_mode<synchronous>, transform_indices = @transform_2, window_bounds = array<i64: 1, 64>}, {pipeline_mode = #tpu.pipeline_mode<synchronous>, transform_indices = @transform_3, window_bounds = array<i64: 1, 64>}, {pipeline_mode = #tpu.pipeline_mode<synchronous>, transform_indices = @transform_4, window_bounds = array<i64: 64, 1792>}, {pipeline_mode = #tpu.pipeline_mode<synchronous>, transform_indices = @transform_5, window_bounds = array<i64: 1, 1792>}, {pipeline_mode = #tpu.pipeline_mode<synchronous>, transform_indices = @transform_6, window_bounds = array<i64: 1, 1792>}, {transform_indices = @transform_7, window_bounds = array<i64: 1, 8, 1792>}]} {
    %c0_i32 = arith.constant 0 : i32
    %0 = arith.cmpi eq, %arg1, %c0_i32 : i32
    %1 = arith.extui %0 : i1 to i32
    %c0_i32_0 = arith.constant 0 : i32
    %2 = arith.cmpi ne, %1, %c0_i32_0 : i32
    scf.if %2 {
      %cst_29 = arith.constant 0.000000e+00 : f32
      %48 = vector.broadcast %cst_29 : f32 to vector<1x8x1792xf32>
      %c0_30 = arith.constant 0 : index
      %c0_31 = arith.constant 0 : index
      %c0_32 = arith.constant 0 : index
      %49 = vector.load %arg9[%c0_30, %c0_31, %c0_32] : memref<1x8x1792xf32, #tpu.memory_space<vmem>>, vector<1x8x1792xf32>
      tpu.vector_store %arg9[%c0_30, %c0_31, %c0_32], %48 {strides = array<i32>} : memref<1x8x1792xf32, #tpu.memory_space<vmem>>, vector<1x8x1792xf32>,
    } else {
    }
    %c0 = arith.constant 0 : index
    %c0_1 = arith.constant 0 : index
    %c0_2 = arith.constant 0 : index
    %3 = vector.load %arg2[%c0, %c0_1, %c0_2] : memref<1x32x32xbf16, #tpu.memory_space<vmem>>, vector<1x32x32xbf16>
    %4 = vector.shape_cast %3 : vector<1x32x32xbf16> to vector<32x32xbf16>
    %c0_3 = arith.constant 0 : index
    %c0_4 = arith.constant 0 : index
    %5 = vector.load %arg3[%c0_3, %c0_4] : memref<32x64xbf16, #tpu.memory_space<vmem>>, vector<32x64xbf16>
    %cst = arith.constant dense<0.000000e+00> : vector<32x64xf32>
    %6 = tpu.matmul %4, %5, %cst {dimension_numbers = #tpu.dot_dimension_numbers<[1], [0], [0], [1], [0, 0, 1, 1], [], []>} : vector<32x32xbf16>, vector<32x64xbf16>, vector<32x64xf32> -> vector<32x64xf32>
    %c0_5 = arith.constant 0 : index
    %c0_6 = arith.constant 0 : index
    %7 = vector.load %arg4[%c0_5, %c0_6] : memref<1x64xf32, #tpu.memory_space<vmem>>, vector<1x64xf32>
    %8 = vector.broadcast %7 : vector<1x64xf32> to vector<32x64xf32>
    %9 = arith.mulf %6, %8 : vector<32x64xf32>
    %c0_7 = arith.constant 0 : index
    %c0_8 = arith.constant 0 : index
    %10 = vector.load %arg5[%c0_7, %c0_8] : memref<1x64xf32, #tpu.memory_space<vmem>>, vector<1x64xf32>
    %11 = vector.broadcast %10 : vector<1x64xf32> to vector<32x64xf32>
    %12 = arith.addf %9, %11 : vector<32x64xf32>
    %cst_9 = arith.constant 5.000000e-01 : f32
    %13 = vector.broadcast %cst_9 : f32 to vector<32x64xf32>
    %14 = arith.mulf %13, %12 : vector<32x64xf32>
    %15 = arith.truncf %14 : vector<32x64xf32> to vector<32x64xbf16>
    %16 = math.tanh %15 : vector<32x64xbf16>
    %17 = arith.extf %16 : vector<32x64xbf16> to vector<32x64xf32>
    %cst_10 = arith.constant 1.000000e+00 : f32
    %18 = vector.broadcast %cst_10 : f32 to vector<32x64xf32>
    %19 = arith.addf %17, %18 : vector<32x64xf32>
    %cst_11 = arith.constant 5.000000e-01 : f32
    %20 = vector.broadcast %cst_11 : f32 to vector<32x64xf32>
    %21 = arith.mulf %20, %19 : vector<32x64xf32>
    %22 = arith.mulf %12, %21 : vector<32x64xf32>
    %23 = arith.truncf %22 : vector<32x64xf32> to vector<32x64xbf16>
    %c0_12 = arith.constant 0 : index
    %c0_13 = arith.constant 0 : index
    %24 = vector.load %arg6[%c0_12, %c0_13] : memref<64x1792xbf16, #tpu.memory_space<vmem>>, vector<64x1792xbf16>
    %cst_14 = arith.constant dense<0.000000e+00> : vector<32x1792xf32>
    %25 = tpu.matmul %23, %24, %cst_14 {dimension_numbers = #tpu.dot_dimension_numbers<[1], [0], [0], [1], [0, 0, 1, 1], [], []>} : vector<32x64xbf16>, vector<64x1792xbf16>, vector<32x1792xf32> -> vector<32x1792xf32>
    %c0_15 = arith.constant 0 : index
    %c0_16 = arith.constant 0 : index
    %26 = vector.load %arg7[%c0_15, %c0_16] : memref<1x1792xf32, #tpu.memory_space<vmem>>, vector<1x1792xf32>
    %27 = vector.broadcast %26 : vector<1x1792xf32> to vector<32x1792xf32>
    %28 = arith.mulf %25, %27 : vector<32x1792xf32>
    %c0_17 = arith.constant 0 : index
    %c0_18 = arith.constant 0 : index
    %29 = vector.load %arg8[%c0_17, %c0_18] : memref<1x1792xf32, #tpu.memory_space<vmem>>, vector<1x1792xf32>
    %30 = vector.broadcast %29 : vector<1x1792xf32> to vector<32x1792xf32>
    %31 = arith.addf %28, %30 : vector<32x1792xf32>
    %cst_19 = arith.constant 5.000000e-01 : f32
    %32 = vector.broadcast %cst_19 : f32 to vector<32x1792xf32>
    %33 = arith.mulf %32, %31 : vector<32x1792xf32>
    %34 = arith.truncf %33 : vector<32x1792xf32> to vector<32x1792xbf16>
    %35 = math.tanh %34 : vector<32x1792xbf16>
    %36 = arith.extf %35 : vector<32x1792xbf16> to vector<32x1792xf32>
    %cst_20 = arith.constant 1.000000e+00 : f32
    %37 = vector.broadcast %cst_20 : f32 to vector<32x1792xf32>
    %38 = arith.addf %36, %37 : vector<32x1792xf32>
    %cst_21 = arith.constant 5.000000e-01 : f32
    %39 = vector.broadcast %cst_21 : f32 to vector<32x1792xf32>
    %40 = arith.mulf %39, %38 : vector<32x1792xf32>
    %41 = arith.mulf %31, %40 : vector<32x1792xf32>
    %c0_22 = arith.constant 0 : index
    %c0_23 = arith.constant 0 : index
    %c0_24 = arith.constant 0 : index
    %42 = vector.load %arg9[%c0_22, %c0_23, %c0_24] : memref<1x8x1792xf32, #tpu.memory_space<vmem>>, vector<1x8x1792xf32>
    %43 = vector.shape_cast %41 : vector<32x1792xf32> to vector<4x8x1792xf32>
    %cst_25 = arith.constant dense<0.000000e+00> : vector<8x1792xf32>
    %44 = vector.multi_reduction <add>, %43, %cst_25 [0] : vector<4x8x1792xf32> to vector<8x1792xf32>
    %45 = vector.shape_cast %44 : vector<8x1792xf32> to vector<1x8x1792xf32>
    %46 = arith.addf %42, %45 : vector<1x8x1792xf32>
    %c0_26 = arith.constant 0 : index
    %c0_27 = arith.constant 0 : index
    %c0_28 = arith.constant 0 : index
    %47 = vector.load %arg9[%c0_26, %c0_27, %c0_28] : memref<1x8x1792xf32, #tpu.memory_space<vmem>>, vector<1x8x1792xf32>
    tpu.vector_store %arg9[%c0_26, %c0_27, %c0_28], %46 {strides = array<i32>} : memref<1x8x1792xf32, #tpu.memory_space<vmem>>, vector<1x8x1792xf32>,
    return
  }
  func.func @transform_0(%arg0: i32, %arg1: i32) -> (i32, i32, i32) {
    %c0_i32 = arith.constant 0 : i32
    %c0_i32_0 = arith.constant 0 : i32
    return %arg0, %arg1, %c0_i32 : i32, i32, i32
  }
  func.func @transform_1(%arg0: i32, %arg1: i32) -> (i32, i32) {
    %c0_i32 = arith.constant 0 : i32
    %c0_i32_0 = arith.constant 0 : i32
    %c0_i32_1 = arith.constant 0 : i32
    return %c0_i32, %c0_i32_0 : i32, i32
  }
  func.func @transform_2(%arg0: i32, %arg1: i32) -> (i32, i32) {
    %c0_i32 = arith.constant 0 : i32
    %c0_i32_0 = arith.constant 0 : i32
    %c0_i32_1 = arith.constant 0 : i32
    return %c0_i32, %c0_i32_0 : i32, i32
  }
  func.func @transform_3(%arg0: i32, %arg1: i32) -> (i32, i32) {
    %c0_i32 = arith.constant 0 : i32
    %c0_i32_0 = arith.constant 0 : i32
    %c0_i32_1 = arith.constant 0 : i32
    return %c0_i32, %c0_i32_0 : i32, i32
  }
  func.func @transform_4(%arg0: i32, %arg1: i32) -> (i32, i32) {
    %c0_i32 = arith.constant 0 : i32
    %c0_i32_0 = arith.constant 0 : i32
    %c0_i32_1 = arith.constant 0 : i32
    return %c0_i32, %c0_i32_0 : i32, i32
  }
  func.func @transform_5(%arg0: i32, %arg1: i32) -> (i32, i32) {
    %c0_i32 = arith.constant 0 : i32
    %c0_i32_0 = arith.constant 0 : i32
    %c0_i32_1 = arith.constant 0 : i32
    return %c0_i32, %c0_i32_0 : i32, i32
  }
  func.func @transform_6(%arg0: i32, %arg1: i32) -> (i32, i32) {
    %c0_i32 = arith.constant 0 : i32
    %c0_i32_0 = arith.constant 0 : i32
    %c0_i32_1 = arith.constant 0 : i32
    return %c0_i32, %c0_i32_0 : i32, i32
  }
  func.func @transform_7(%arg0: i32, %arg1: i32) -> (i32, i32, i32) {
    %c0_i32 = arith.constant 0 : i32
    %c0_i32_0 = arith.constant 0 : i32
    %c0_i32_1 = arith.constant 0 : i32
    return %arg0, %c0_i32, %c0_i32_0 : i32, i32, i32
  }
}

</mosaic_0001>

<bundles_post_ra>
// kernel: automorph_forward.1
= control target key start
LH: loop header
LB: loop body
LE: loop exit
PB: predicated region body
PF: predicated region fallthrough
CT: control target
= control target key end

     0   :  { %12 = vsyncpa [#allocation3], 0  ;;  %s3444_s0 = inlined_call_operand.vmem [shape: bf16[2,64,32], index: 0, kind: input, shape index: {}]   ;;  %s3445_s1 = inlined_call_operand.hbm [shape: bf16[32,64], index: 1, kind: input, shape index: {}]   ;;  %s3446_s2 = inlined_call_operand.hbm [shape: f32[1,64], index: 2, kind: input, shape index: {}]   ;;  %s3447_s3 = inlined_call_operand.hbm [shape: f32[1,64], index: 3, kind: input, shape index: {}]   ;;  %s3448_s4 = inlined_call_operand.hbm [shape: bf16[64,1792], index: 4, kind: input, shape index: {}]   ;;  %s3449_s5 = inlined_call_operand.hbm [shape: f32[1,1792], index: 5, kind: input, shape index: {}]   ;;  %s3450_s6 = inlined_call_operand.hbm [shape: f32[1,1792], index: 6, kind: input, shape index: {}]   ;;  %s3451_s7 = inlined_call_operand.vmem [shape: f32[2,8,1792], index: 7, kind: output, shape index: {}]  }
   0x1   :  { %13 = vsyncpa [#allocation5], 0 }
   0x2   :  { %14 = vsyncpa [#allocation8], 0 }
   0x3   :  { %15 = vsyncpa [#allocation11], 0  ;;  %s2701_s24 = smov 0   ;;  %s2703_s25 = smov 0  }
   0x4   :  { %s2705_s26 = smov 0   ;;  %s2707_s27 = smov 0  }
   0x5   :  { %s2709_s28 = smov 0  }
   0x6 LB: > { %s2649_s29 = smov [#allocation4]   ;;  %s2067_s8 = sadd.s32 4294967295, %s2647_s28   ;;  %s2647_s28 = sphi %s2709_s28, %s21_s28   ;;  %s2643_s27 = sphi %s2707_s27, %s3521_s27   ;;  %s2639_s26 = sphi %s2705_s26, %s3520_s26   ;;  %s2635_s25 = sphi %s2703_s25, %s3519_s25   ;;  %s2631_s24 = sphi %s2701_s24, %s3518_s24  }
   0x7   : > { %s244_s30 = sshll.u32 %s2649_s29, 4  ;;  %p2069_p0 = scmp.ge.s32.totalorder %s2647_s28, 1  ;;  %s245_s30 = int_to_ptr.vmem [resolvable:$true] %s244_s30 }
   0x8   : > { %p218_p1 = scmp.lt.s32.totalorder %s2647_s28, 5  ;;  %p2729_p2 = scmp.eq.s32.totalorder %s2067_s8, 0 }
   0x9   : > { %s2650_s11 = smov [#allocation7]   ;;  %s2448_s15 = scalar_lea.vmem %s245_s30, 16 }
   0xa   : > { %s3475_s9 = scalar_select %p2729_p2, 1, 0 }
   0xb   : > { %p2733_p3 = pnand %p2069_p0, %p218_p1  ;;  %s265_s12 = sshll.u32 %s2650_s11, 4  ;;  %s266_s12 = int_to_ptr.vmem [resolvable:$true] %s265_s12 }
   0xc   : > { %p2449_p7 = scmp.ne.s32.totalorder %s245_s30, %s2448_s15  ;;  %s2455_s16 = scalar_lea.vmem %s245_s30, 32 }
   0xd   : > { %s3476_s10 = scalar_select %p2733_p3, 1, 0 }
   0xe   : > { %p2206_p4 = pneg %p2733_p3  ;;  %p2456_p10 = scmp.lt.s32.totalorder %s245_s30, %s245_s30 }
   0xf   : > { %p2457_p11 = scmp.lt.s32.totalorder %s2455_s16, %s2448_s15 }
  0x10   : > { %p2741_p5 = pnand %p2729_p2, %p2206_p4 }
  0x11   : > { %p2458_p12 = por %p2457_p11, %p2456_p10 }
  0x12   : > { %p2747_p6 = pneg %p2741_p5 }
  0x14   : > { %p2451_p8 = pnand %p2449_p7, %p2747_p6 }
  0x16   : > { %p2452_p9 = pneg %p2451_p8 }
  0x18   : > { %p2459_p13 = pnand %p2458_p12, %p2452_p9 }
  0x1a   : > { %2462 = shalt.err (!%p2459_p13)
}
  0x1b   : > { %2212 = dma.hbm_to_vmem [thread:$0]  (!%p2741_p5), %s3446_s2, 16, %s245_s30, [#allocation5]  }
  0x1c   : > { %s2474_s19 = scalar_lea.vmem %s266_s12, 7168  ;;  %p2482_p7 = scmp.lt.s32.totalorder %s266_s12, %s266_s12 }
  0x1d   : > { %p2475_p0 = scmp.ne.s32.totalorder %s266_s12, %s2474_s19  ;;  %p2483_p8 = scmp.lt.s32.totalorder %s2474_s19, %s2474_s19 }
  0x1f   : > { %p2477_p1 = pnand %p2475_p0, %p2747_p6  ;;  %p2484_p2 = por %p2483_p8, %p2482_p7 }
  0x21   : > { %p2478_p4 = pneg %p2477_p1 }
  0x23   : > { %p2485_p3 = pnand %p2484_p2, %p2478_p4 }
  0x25   : > { %2488 = shalt.err (!%p2485_p3)
}
  0x26   : > { %s2651_s20 = smov 896   ;;  %s2652_s21 = smov 56  }
  0x27   : > { %2218 = dma.hbm_to_vmem [thread:$0]  (!%p2741_p5), %s3448_s4, 7168, %s266_s12, [#allocation8], %s2651_s20, %s2651_s20, %s2652_s21  }
  0x28   : > { %s30_s29 = sadd.s32 1, %s2639_s26  ;;  %s33_s30 = sadd.s32 1, %s2643_s27 }
  0x29   : > { %p31_p9 = scmp.ge.s32.totalorder %s30_s29, 2  ;;  %s2653_s8 = smov [#allocation2]  }
  0x2a   : > { %s230_s11 = sshll.u32 %s2653_s8, 4  ;;  %s231_s11 = int_to_ptr.vmem [resolvable:$true] %s230_s11 }
  0x2b   : > { %s3523_s29 = smov (%p31_p9, %s30_s29), 0  ;;  %s3525_s30 = smov (!%p31_p9, %s33_s30), %s2643_s27 }
  0x2c   : > { %p35_p2 = scmp.ge.s32.totalorder %s3525_s30, 2  ;;  %s2500_s15 = scalar_lea.vmem %s231_s11, 256 }
  0x2d   : > { %p2501_p3 = scmp.ne.s32.totalorder %s231_s11, %s2500_s15  ;;  %p2508_p12 = scmp.lt.s32.totalorder %s231_s11, %s231_s11 }
  0x2e   : > { %p2509_p13 = scmp.lt.s32.totalorder %s2500_s15, %s2500_s15 }
  0x2f   : > { %p2503_p10 = pnand %p2501_p3, %p2747_p6 }
  0x30   : > { %p2510_p0 = por %p2509_p13, %p2508_p12 }
  0x31   : > { %p2504_p11 = pneg %p2503_p10 }
  0x33   : > { %p2511_p1 = pnand %p2510_p0, %p2504_p11 }
  0x35   : > { %2514 = shalt.err (!%p2511_p1)
}
  0x36   : > { %s2654_s12 = smov 64   ;;  %s2655_s16 = smov 4  }
  0x37   : > { %2209 = dma.hbm_to_vmem [thread:$0]  (!%p2741_p5), %s3445_s1, 256, %s231_s11, [#allocation3], %s2654_s12, %s2654_s12, %s2655_s16  }
  0x38   : > { %s3527_s30 = smov (%p35_p2, %s3525_s30), 0  ;;  %s2656_s19 = smov [#allocation6]  }
  0x39   : > { %s255_s20 = sshll.u32 %s2656_s19, 4  ;;  %s2657_s21 = smov [#allocation9]   ;;  %s256_s20 = int_to_ptr.vmem [resolvable:$true] %s255_s20 }
  0x3a   : > { %s279_s22 = sshll.u32 %s2657_s21, 4  ;;  %s2526_s23 = scalar_lea.vmem %s256_s20, 16  ;;  %s280_s22 = int_to_ptr.vmem [resolvable:$true] %s279_s22 }
  0x3b   : > { %p2527_p4 = scmp.ne.s32.totalorder %s256_s20, %s2526_s23  ;;  %s2533_s8 = scalar_lea.vmem %s256_s20, 32 }
  0x3c   : > { %p2534_p9 = scmp.lt.s32.totalorder %s256_s20, %s256_s20  ;;  %p2535_p3 = scmp.lt.s32.totalorder %s2533_s8, %s2526_s23 }
  0x3d   : > { %p2529_p7 = pnand %p2527_p4, %p2747_p6 }
  0x3e   : > { %p2536_p10 = por %p2535_p3, %p2534_p9 }
  0x3f   : > { %p2530_p8 = pneg %p2529_p7 }
  0x41   : > { %p2537_p11 = pnand %p2536_p10, %p2530_p8 }
  0x43   : > { %2540 = shalt.err (!%p2537_p11)
}
  0x44   : > { %2215 = dma.hbm_to_vmem [thread:$0]  (!%p2741_p5), %s3447_s3, 16, %s256_s20, [#allocation5]  }
  0x45   : > { %s2552_s12 = scalar_lea.vmem %s280_s22, 224  ;;  %p2560_p0 = scmp.lt.s32.totalorder %s280_s22, %s280_s22 }
  0x46   : > { %p2553_p2 = scmp.ne.s32.totalorder %s280_s22, %s2552_s12  ;;  %p2561_p1 = scmp.lt.s32.totalorder %s2552_s12, %s2552_s12 }
  0x48   : > { %p2555_p12 = pnand %p2553_p2, %p2747_p6  ;;  %p2562_p4 = por %p2561_p1, %p2560_p0 }
  0x4a   : > { %p2556_p13 = pneg %p2555_p12 }
  0x4c   : > { %p2563_p7 = pnand %p2562_p4, %p2556_p13 }
  0x4e   : > { %2566 = shalt.err (!%p2563_p7)
}
  0x4f   : > { %2221 = dma.hbm_to_vmem [thread:$0]  (!%p2741_p5), %s3449_s5, 224, %s280_s22, [#allocation8]  }
  0x50   : > { %s2658_s18 = smov [#allocation10]  }
  0x51   : > { %s290_s19 = sshll.u32 %s2658_s18, 4  ;;  %s291_s19 = int_to_ptr.vmem [resolvable:$true] %s290_s19 }
  0x52   : > { %s2578_s20 = scalar_lea.vmem %s291_s19, 224  ;;  %p2586_p10 = scmp.lt.s32.totalorder %s291_s19, %s291_s19 }
  0x53   : > { %p2579_p8 = scmp.ne.s32.totalorder %s291_s19, %s2578_s20  ;;  %p2587_p11 = scmp.lt.s32.totalorder %s2578_s20, %s2578_s20 }
  0x55   : > { %p2581_p9 = pnand %p2579_p8, %p2747_p6  ;;  %p2588_p2 = por %p2587_p11, %p2586_p10 }
  0x57   : > { %p2582_p3 = pneg %p2581_p9 }
  0x59   : > { %p2589_p12 = pnand %p2588_p2, %p2582_p3 }
  0x5b   : > { %2592 = shalt.err (!%p2589_p12)
}
  0x5c   : > { %2224 = dma.hbm_to_vmem [thread:$0]  (!%p2741_p5), %s3450_s6, 224, %s291_s19, [#allocation11]  }
  0x5d   : > { %p3479_p13 = scmp.ne.s32.totalorder %s3476_s10, 0 }
  0x5f   : > { %316 = sbr.rel (%p3479_p13) target bundleno = 705 (0x2c1), region = 48 }
  0x64   : > { %p3480_p0 = scmp.ne.s32.totalorder %s3475_s9, 0 }
  0x66   : > { %2614 = dma.done.wait (%p3480_p0), [#allocation3], 256  }
  0x67   : > { %2616 = vsyncadd (%p3480_p0), [#allocation3], 4294967040 }
  0x68   : > { %2618 = dma.done.wait (%p3480_p0), [#allocation5], 32  }
  0x69   : > { %2620 = vsyncadd (%p3480_p0), [#allocation5], 4294967264 }
  0x6a   : > { %2622 = dma.done.wait (%p3480_p0), [#allocation8], 7392  }
  0x6b   : > { %2624 = vsyncadd (%p3480_p0), [#allocation8], 4294959904 }
  0x6c   : > { %2626 = dma.done.wait (%p3480_p0), [#allocation11], 224  }
  0x6d   : > { %2628 = vsyncadd (%p3480_p0), [#allocation11], 4294967072  ;;  %s2084_s10 = sshll.u32 %s2631_s24, 2  ;;  %p373_p5 = scmp.lt.s32.totalorder %s2635_s25, 1 }
  0x6e   : > { %p375_p6 = scmp.lt.s32.totalorder %s2084_s10, 7  ;;  %p2088_p1 = scmp.ne.s32.totalorder %s2631_s24, 0 }
  0x6f   : > { %s3529_s25 = smov (!%p373_p5, %s2635_s25), 1 }
  0x70   : > { %s3531_s10 = smov (!%p375_p6, %s2084_s10), 7  ;;  %s2085_s13 = sshll.u32 %s3529_s25, 3 }
  0x71   : > { %s2181_s14 = smul.u32 112, %s3529_s25  ;;  %s378_s22 = sadd.s32 %s2085_s13, %s3531_s10 }
  0x72   : > { %s2086_s8 = sshll.u32 %s378_s22, 2  ;;  %391 = sbr.rel (%p2088_p1) target bundleno = 127 (0x7f), region = 76 }
  0x73   : > { %s2825_s12 = scalar_lea.vmem %s3451_s7, %s2181_s14  ;;  %s380_s17 = scalar_lea.vmem %s3444_s0, %s2086_s8 }
  0x77   : > { %v2659_v0 = vmov 0.0  }
  0x78   : > { %392 = vst [vmem:[%s2825_s12] sm:$0xff] %v2659_v0  ;;  %393 = vst [vmem:[%s2825_s12 + $0x8] sm:$0xff] %v2659_v0 }
  0x79   : > { %394 = vst [vmem:[%s2825_s12 + $0x10] sm:$0xff] %v2659_v0  ;;  %395 = vst [vmem:[%s2825_s12 + $0x18] sm:$0xff] %v2659_v0 }
  0x7a   : > { %396 = vst [vmem:[%s2825_s12 + $0x20] sm:$0xff] %v2659_v0  ;;  %397 = vst [vmem:[%s2825_s12 + $0x28] sm:$0xff] %v2659_v0 }
  0x7b   : > { %398 = vst [vmem:[%s2825_s12 + $0x30] sm:$0xff] %v2659_v0  ;;  %399 = vst [vmem:[%s2825_s12 + $0x38] sm:$0xff] %v2659_v0 }
  0x7c   : > { %400 = vst [vmem:[%s2825_s12 + $0x40] sm:$0xff] %v2659_v0  ;;  %401 = vst [vmem:[%s2825_s12 + $0x48] sm:$0xff] %v2659_v0 }
  0x7d   : > { %402 = vst [vmem:[%s2825_s12 + $0x50] sm:$0xff] %v2659_v0  ;;  %403 = vst [vmem:[%s2825_s12 + $0x58] sm:$0xff] %v2659_v0 }
  0x7e   : > { %404 = vst [vmem:[%s2825_s12 + $0x60] sm:$0xff] %v2659_v0  ;;  %405 = vst [vmem:[%s2825_s12 + $0x68] sm:$0xff] %v2659_v0 }
  0x7f PF: > { %v2289_v1 = vld [vmem:[#allocation2 + $0x8] sm:$0xff]   ;;  %v2290_v2 = vld [vmem:[#allocation2] sm:$0xff]   ;;  %vm436_vm0 = vcmask 261120   ;;  %v2299_v9 = vld [vmem:[#allocation7 + $0xe4] ss:$56 sps:$4 sm:$0xff]   ;;  %v2660_v22 = vmov 0  }
  0x80   : > { %2173 = vmatprep.subr.bf16.mxu0 %v2289_v1  ;;  %v2291_v3 = vld [vmem:[%s380_s17] sm:$0xff]   ;;  %v2292_v4 = vld [vmem:[%s380_s17 + $0x8] sm:$0xff]   ;;  %v2302_v12 = vld [vmem:[#allocation7 + $0xe8] ss:$56 sps:$4 sm:$0xff]   ;;  %915 = vmatprep.mubr.bf16.mxu1 %v2660_v22  ;;  %vm876_vm1 = vcmask 523264  }
  0x81   : > { %2174 = vmatpush3.bf16.msra.mxu0 %v2289_v1  ;;  %2177 = vmatprep.mubr.msk.bf16.mxu0 %vm436_vm0, %v2291_v3  ;;  %v2293_v5 = vld [vmem:[#allocation7 + $0x154] ss:$56 sps:$4 sm:$0xff]   ;;  %v2295_v7 = vld [vmem:[#allocation7 + $0x150] ss:$56 sps:$4 sm:$0xff]   ;;  %v2301_v11 = vld [vmem:[#allocation7 + $0xe0] ss:$56 sps:$4 sm:$0xff]  }
  0x82   : > { %2175 = vmatprep.subr.bf16.mxu0 %v2290_v2  ;;  %v2298_v6 = vld [vmem:[#allocation7 + $0x15c] ss:$56 sps:$4 sm:$0xff]   ;;  %v2296_v8 = vld [vmem:[#allocation7 + $0x158] ss:$56 sps:$4 sm:$0xff]   ;;  %891 = vmatprep.subr.bf16.mxu1 %v2293_v5  ;;  %v2304_v10 = vld [vmem:[#allocation7 + $0xec] ss:$56 sps:$4 sm:$0xff]  }
  0x83   : > { %892 = vmatpush1.bf16.msra.mxu1 %v2295_v7  ;;  %v2305_v13 = vld [vmem:[#allocation7 + $0x74] ss:$56 sps:$4 sm:$0xff]   ;;  %v2307_v15 = vld [vmem:[#allocation7 + $0x70] ss:$56 sps:$4 sm:$0xff]   ;;  %v2311_v17 = vld [vmem:[#allocation7 + $0x4] ss:$56 sps:$4 sm:$0xff]  }
  0x84   : > { %893 = vmatprep.subr.bf16.mxu1 %v2299_v9  ;;  %v2310_v14 = vld [vmem:[#allocation7 + $0x7c] ss:$56 sps:$4 sm:$0xff]   ;;  %v2308_v16 = vld [vmem:[#allocation7 + $0x78] ss:$56 sps:$4 sm:$0xff]   ;;  %v2316_v18 = vld [vmem:[#allocation7 + $0xc] ss:$56 sps:$4 sm:$0xff]  }
  0x85   : > { %2176 = vmatpush3.bf16.msra.mxu0 %v2290_v2  ;;  %v2313_v19 = vld [vmem:[#allocation7] ss:$56 sps:$4 sm:$0xff]   ;;  %v2319_v21 = vld [vmem:[#allocation7 + $0x164] ss:$56 sps:$4 sm:$0xff]   ;;  %v2325_v63 = vld [vmem:[#allocation7 + $0xf4] ss:$56 sps:$4 sm:$0xff]  }
  0x86   : > { %944 = vmatprep.subr.bf16.mxu0 %v2298_v6  ;;  %v2314_v20 = vld [vmem:[#allocation7 + $0x8] ss:$56 sps:$4 sm:$0xff]   ;;  %v2322_v23 = vld [vmem:[#allocation7 + $0x16c] ss:$56 sps:$4 sm:$0xff]   ;;  %v2095_v24 = vld [vmem:[#allocation4] ss:$0 sm:$0xff] }
  0x87   : > { %894 = vmatpush1.bf16.msra.mxu1 %v2301_v11  ;;  %v2096_v27 = vld [vmem:[#allocation6] ss:$0 sm:$0xff]  ;;  %v2317_v58 = vld [vmem:[#allocation7 + $0x160] ss:$56 sps:$4 sm:$0xff]   ;;  %v2323_v1 = vld [vmem:[#allocation7 + $0xf0] ss:$56 sps:$4 sm:$0xff]  }
  0x88   : > { %2178 = vmatmul.mubr.msk.bf16.vlgmr.msra.gmra.mxu0 %vm436_vm0, %v2292_v4  ;;  %895 = vmatprep.subr.bf16.mxu1 %v2305_v13  ;;  %v2320_v59 = vld [vmem:[#allocation7 + $0x168] ss:$56 sps:$4 sm:$0xff]   ;;  %v2328_v0 = vld [vmem:[#allocation7 + $0xfc] ss:$56 sps:$4 sm:$0xff]   ;;  %v2326_v2 = vld [vmem:[#allocation7 + $0xf8] ss:$56 sps:$4 sm:$0xff]  }
  0x89   : > { %945 = vmatpush1.bf16.msra.mxu0 %v2296_v8  ;;  %968 = vmatprep.mubr.bf16.mxu0 %v2660_v22  ;;  %v2331_v5 = vld [vmem:[#allocation7 + $0x84] ss:$56 sps:$4 sm:$0xff]   ;;  %v2329_v7 = vld [vmem:[#allocation7 + $0x80] ss:$56 sps:$4 sm:$0xff]  }
  0x8a   : > { %946 = vmatprep.subr.bf16.mxu0 %v2304_v10  ;;  %v2334_v6 = vld [vmem:[#allocation7 + $0x8c] ss:$56 sps:$4 sm:$0xff]   ;;  %v2332_v8 = vld [vmem:[#allocation7 + $0x88] ss:$56 sps:$4 sm:$0xff]   ;;  %v2340_v11 = vld [vmem:[#allocation7 + $0x1c] ss:$56 sps:$4 sm:$0xff]  }
  0x8b   : > { %896 = vmatpush1.bf16.msra.mxu1 %v2307_v15  ;;  %v2337_v10 = vld [vmem:[#allocation7 + $0x14] ss:$56 sps:$4 sm:$0xff]   ;;  %v2338_v13 = vld [vmem:[#allocation7 + $0x18] ss:$56 sps:$4 sm:$0xff]  }
  0x8c   : > { %897 = vmatprep.subr.bf16.mxu1 %v2311_v17  ;;  %v2346_v15 = vld [vmem:[#allocation7 + $0x17c] ss:$56 sps:$4 sm:$0xff]   ;;  %v2344_v17 = vld [vmem:[#allocation7 + $0x178] ss:$56 sps:$4 sm:$0xff]  }
  0x8d   : > { %947 = vmatpush1.bf16.msra.mxu0 %v2302_v12  ;;  %v2335_v12 = vld [vmem:[#allocation7 + $0x10] ss:$56 sps:$4 sm:$0xff]  }
  0x8e   : > { %948 = vmatprep.subr.bf16.mxu0 %v2310_v14  ;;  %v2343_v14 = vld [vmem:[#allocation7 + $0x174] ss:$56 sps:$4 sm:$0xff]  }
  0x8f   : > { %898 = vmatpush1.bf16.msra.mxu1 %v2313_v19  ;;  %v2352_v19 = vld [vmem:[#allocation7 + $0x10c] ss:$56 sps:$4 sm:$0xff]  }
  0x90   : > { %997 = vmatprep.subr.bf16.mxu1 %v2319_v21  ;;  %v2350_v21 = vld [vmem:[#allocation7 + $0x108] ss:$56 sps:$4 sm:$0xff]  }
  0x91   : > { %949 = vmatpush1.bf16.msra.mxu0 %v2308_v16  ;;  %v2341_v16 = vld [vmem:[#allocation7 + $0x170] ss:$56 sps:$4 sm:$0xff]  }
  0x92   : > { %950 = vmatprep.subr.bf16.mxu0 %v2316_v18  ;;  %v2349_v18 = vld [vmem:[#allocation7 + $0x104] ss:$56 sps:$4 sm:$0xff]  }
  0x95   : > { %951 = vmatpush1.bf16.msra.mxu0 %v2314_v20  ;;  %v2347_v20 = vld [vmem:[#allocation7 + $0x100] ss:$56 sps:$4 sm:$0xff]  }
  0x96   : > { %1050 = vmatprep.subr.bf16.mxu0 %v2322_v23  ;;  %v2355_v23 = vld [vmem:[#allocation7 + $0x94] ss:$56 sps:$4 sm:$0xff]  }
 0x148   : > { %v2179_v25 = vpop.f32.mrf.mxu0 }
 0x149   : > { %v501_v26 = vmul.f32 %v2179_v25, %v2095_v24  ;;  %v2353_v25 = vld [vmem:[#allocation7 + $0x90] ss:$56 sps:$4 sm:$0xff]  }
 0x14a   : > { %v477_v28 = vpop.f32.mrf.mxu0 }
 0x14b   : > { %v499_v29 = vmul.f32 %v2095_v24, %v477_v28  ;;  %v512_v31 = vadd.f32 %v2096_v27, %v501_v26  ;;  %v2356_v26 = vld [vmem:[#allocation7 + $0x98] ss:$56 sps:$4 sm:$0xff]   ;;  %v2364_v28 = vld [vmem:[#allocation7 + $0x2c] ss:$56 sps:$4 sm:$0xff]  }
 0x14c   : > { %v2180_v30 = vpop.f32.mrf.mxu0 }
 0x14d   : > { %v502_v32 = vmul.f32 %v2180_v30, %v2095_v24  ;;  %v510_v34 = vadd.f32 %v2096_v27, %v499_v29  ;;  %v516_v37 = vmul.f32 0.5, %v512_v31  ;;  %v2359_v29 = vld [vmem:[#allocation7 + $0x20] ss:$56 sps:$4 sm:$0xff]  }
 0x14e   : > { %v480_v33 = vpop.f32.mrf.mxu0  ;;  %v2362_v30 = vld [vmem:[#allocation7 + $0x28] ss:$56 sps:$4 sm:$0xff]  }
 0x14f   : > { %v513_v35 = vadd.f32 %v2096_v27, %v502_v32  ;;  %v500_v36 = vmul.f32 %v2095_v24, %v480_v33  ;;  %v514_v40 = vmul.f32 0.5, %v510_v34  ;;  %v2358_v24 = vld [vmem:[#allocation7 + $0x9c] ss:$56 sps:$4 sm:$0xff]   ;;  %v2365_v32 = vld [vmem:[#allocation7 + $0x180] ss:$56 sps:$4 sm:$0xff]  }
 0x150   : > { %v2370_v33 = vld [vmem:[#allocation7 + $0x114] ss:$56 sps:$4 sm:$0xff]  }
 0x151   : > { %v517_v38 = vmul.f32 0.5, %v513_v35  ;;  %v511_v39 = vadd.f32 %v2096_v27, %v500_v36  ;;  %v2361_v27 = vld [vmem:[#allocation7 + $0x24] ss:$56 sps:$4 sm:$0xff]   ;;  %v2371_v36 = vld [vmem:[#allocation7 + $0xa0] ss:$56 sps:$4 sm:$0xff]  }
 0x153   : > { %v519_v41 = vpack.c.bf16 %v517_v38, %v516_v37  ;;  %v515_v42 = vmul.f32 0.5, %v511_v39  ;;  %v2376_v37 = vld [vmem:[#allocation7 + $0x34] ss:$56 sps:$4 sm:$0xff]   ;;  %v2374_v38 = vld [vmem:[#allocation7 + $0x30] ss:$56 sps:$4 sm:$0xff]  }
 0x155   : > { %2377 = vtanh.bf16 %v519_v41  ;;  %v518_v43 = vpack.c.bf16 %v515_v42, %v514_v40 }
 0x157   : > { %2379 = vtanh.bf16 %v518_v43  ;;  %v1254_v43 = vld [vmem:[#allocation9] sm:$0xff] }
 0x163   : > { %v2378_v44 = vpop.eup %2377 }
 0x164   : > { %v524_v46 = vunpack.c.l.bf16 %v2378_v44  ;;  %v525_v47 = vunpack.c.h.bf16 %v2378_v44 }
 0x165   : > { %v2380_v45 = vpop.eup %2379 }
 0x166   : > { %v522_v48 = vunpack.c.l.bf16 %v2380_v45  ;;  %v523_v49 = vunpack.c.h.bf16 %v2380_v45  ;;  %v528_v52 = vadd.f32 1.0, %v524_v46  ;;  %v529_v53 = vadd.f32 1.0, %v525_v47  ;;  %v1384_v47 = vld [vmem:[#allocation10] sm:$0xff] }
 0x168   : > { %v526_v50 = vadd.f32 1.0, %v522_v48  ;;  %v527_v51 = vadd.f32 1.0, %v523_v49  ;;  %v532_v60 = vmul.f32 0.5, %v528_v52  ;;  %v533_v61 = vmul.f32 0.5, %v529_v53 }
 0x16a   : > { %v530_v54 = vmul.f32 0.5, %v526_v50  ;;  %v531_v55 = vmul.f32 0.5, %v527_v51  ;;  %v536_v3 = vmul.f32 %v532_v60, %v512_v31  ;;  %v537_v4 = vmul.f32 %v533_v61, %v513_v35  ;;  %v2367_v31 = vld [vmem:[#allocation7 + $0x184] ss:$56 sps:$4 sm:$0xff]  }
 0x16b   : > { %v2373_v35 = vld [vmem:[#allocation7 + $0xa4] ss:$56 sps:$4 sm:$0xff]  }
 0x16c   : > { %v534_v56 = vmul.f32 %v530_v54, %v510_v34  ;;  %v535_v57 = vmul.f32 %v531_v55, %v511_v39  ;;  %v2855_v9 = vpack.c.bf16 %v537_v4, %v536_v3  ;;  %v2368_v34 = vld [vmem:[#allocation7 + $0x110] ss:$56 sps:$4 sm:$0xff]   ;;  %v1258_v39 = vlaneseq }
 0x16e   : > { %v2847_v62 = vpack.c.bf16 %v535_v57, %v534_v56  ;;  %v1259_v40 = vshrl.u32 %v1258_v39, 7 }
 0x170   : > { %2153 = vmatmul.mubr.msk.bf16.vlgmr.msra.gmra.mxu1 %vm876_vm1, %v2847_v62  ;;  %2155 = vmatmul.mubr.msk.bf16.vlgmr.msra.gmra.mxu0 %vm876_vm1, %v2847_v62  ;;  %v2891_v41 = vsub.s32 0, %v1259_v40  ;;  %v2893_v42 = vsub.s32 2, %v1259_v40  ;;  %v2895_v44 = vsub.s32 1, %v1259_v40  ;;  %v2897_v45 = vsub.s32 3, %v1259_v40 }
 0x171   : > { %998 = vmatpush1.bf16.msra.mxu1 %v2317_v58  ;;  %1051 = vmatpush1.bf16.msra.mxu0 %v2320_v59  ;;  %v2911_v50 = vsub.s32 4, %v1259_v40  ;;  %v1284_v51 = vsub.s32 6, %v1259_v40  ;;  %v2921_v58 = vsub.s32 5, %v1259_v40  ;;  %v1288_v59 = vsub.s32 7, %v1259_v40 }
 0x172   : > { %999 = vmatprep.subr.bf16.mxu1 %v2325_v63  ;;  %1052 = vmatprep.subr.bf16.mxu0 %v2328_v0  ;;  %3481 = vst [vmem:[#allocation16_spill] sm:$0xff] %v2897_v45  ;;  %v2900_v46 = vrot.slane %v1254_v43, %v2891_v41  ;;  %v2906_v48 = vrot.slane %v1254_v43, %v2895_v44 }
 0x173   : > { %925 = vmatprep.mubr.bf16.mxu1 %v2660_v22  ;;  %978 = vmatprep.mubr.bf16.mxu0 %v2660_v22  ;;  %v2909_v49 = vrot.slane %v1254_v43, %v2897_v45  ;;  %3482 = vst [vmem:[#allocation17_spill] sm:$0xff] %v2911_v50  ;;  %v2914_v53 = vrot.slane %v1384_v47, %v2891_v41  ;;  %3483 = vst [vmem:[#allocation18_spill] sm:$0xff] %v2921_v58 }
 0x174   : > { %v2917_v55 = vrot.slane %v1384_v47, %v2893_v42  ;;  %v2924_v61 = vrot.slane %v1384_v47, %v2895_v44  ;;  %v2927_v63 = vrot.slane %v1384_v47, %v2897_v45  ;;  %v2934_v3 = vrot.slane %v1254_v43, %v1284_v51 }
 0x175   : > { %1000 = vmatpush1.bf16.msra.mxu1 %v2323_v1  ;;  %1053 = vmatpush1.bf16.msra.mxu0 %v2326_v2  ;;  %v2932_v2 = vrot.slane %v1254_v43, %v2911_v50 }
 0x176   : > { %1001 = vmatprep.subr.bf16.mxu1 %v2331_v5  ;;  %1054 = vmatprep.subr.bf16.mxu0 %v2334_v6 }
 0x178   : > { %2154 = vmatmul.mubr.msk.bf16.gmra.mxu1 %vm876_vm1, %v2855_v9  ;;  %2156 = vmatmul.mubr.msk.bf16.gmra.mxu0 %vm876_vm1, %v2855_v9 }
 0x179   : > { %1002 = vmatpush1.bf16.msra.mxu1 %v2329_v7  ;;  %1055 = vmatpush1.bf16.msra.mxu0 %v2332_v8  ;;  %v2943_v8 = vrot.slane %v1384_v47, %v2911_v50 }
 0x17a   : > { %1003 = vmatprep.subr.bf16.mxu1 %v2337_v10  ;;  %1056 = vmatprep.subr.bf16.mxu0 %v2340_v11  ;;  %v2947_v10 = vld [vmem:[#allocation9 + $0x8] sm:$0x3f]  ;;  %v2950_v11 = vrot.slane %v1254_v43, %v2921_v58 }
 0x17b   : > { %1021 = vmatprep.mubr.bf16.mxu1 %v2660_v22  ;;  %1074 = vmatprep.mubr.bf16.mxu0 %v2660_v22  ;;  %3484 = vst [vmem:[#allocation19_spill] sm:$0xff] %v2947_v10 }
 0x17d   : > { %1004 = vmatpush1.bf16.msra.mxu1 %v2335_v12  ;;  %1057 = vmatpush1.bf16.msra.mxu0 %v2338_v13  ;;  %v2953_v12 = vrot.slane %v1384_v47, %v2921_v58  ;;  %v2955_v13 = vrot.slane %v1254_v43, %v1288_v59 }
 0x17e   : > { %1103 = vmatprep.subr.bf16.mxu1 %v2343_v14  ;;  %1156 = vmatprep.subr.bf16.mxu0 %v2346_v15  ;;  %v2957_v14 = vrot.slane %v1384_v47, %v1288_v59 }
 0x180   : > { %2157 = vmatmul.mubr.msk.bf16.vlgmr.msra.gmra.mxu1 %vm876_vm1, %v2847_v62  ;;  %2159 = vmatmul.mubr.msk.bf16.vlgmr.msra.gmra.mxu0 %vm876_vm1, %v2847_v62 }
 0x181   : > { %1104 = vmatpush1.bf16.msra.mxu1 %v2341_v16  ;;  %1157 = vmatpush1.bf16.msra.mxu0 %v2344_v17 }
 0x182   : > { %1105 = vmatprep.subr.bf16.mxu1 %v2349_v18  ;;  %1158 = vmatprep.subr.bf16.mxu0 %v2352_v19 }
 0x183   : > { %1031 = vmatprep.mubr.bf16.mxu1 %v2660_v22  ;;  %1084 = vmatprep.mubr.bf16.mxu0 %v2660_v22 }
 0x185   : > { %1106 = vmatpush1.bf16.msra.mxu1 %v2347_v20  ;;  %1159 = vmatpush1.bf16.msra.mxu0 %v2350_v21 }
 0x186   : > { %1107 = vmatprep.subr.bf16.mxu1 %v2355_v23  ;;  %1160 = vmatprep.subr.bf16.mxu0 %v2358_v24  ;;  %v2971_v24 = vrot.slane %v2947_v10, %v2891_v41 }
 0x188   : > { %2158 = vmatmul.mubr.msk.bf16.gmra.mxu1 %vm876_vm1, %v2855_v9  ;;  %2160 = vmatmul.mubr.msk.bf16.gmra.mxu0 %vm876_vm1, %v2855_v9 }
 0x189   : > { %1108 = vmatpush1.bf16.msra.mxu1 %v2353_v25  ;;  %1161 = vmatpush1.bf16.msra.mxu0 %v2356_v26  ;;  %v2975_v25 = vrot.slane %v2947_v10, %v2893_v42 }
 0x18a   : > { %1109 = vmatprep.subr.bf16.mxu1 %v2361_v27  ;;  %1162 = vmatprep.subr.bf16.mxu0 %v2364_v28 }
 0x18b   : > { %1127 = vmatprep.mubr.bf16.mxu1 %v2660_v22  ;;  %1180 = vmatprep.mubr.bf16.mxu0 %v2660_v22  ;;  %3485 = vst [vmem:[#allocation20_spill] sm:$0xff] %v2975_v25 }
 0x18d   : > { %1110 = vmatpush1.bf16.msra.mxu1 %v2359_v29  ;;  %1163 = vmatpush1.bf16.msra.mxu0 %v2362_v30 }
 0x18e   : > { %1209 = vmatprep.subr.bf16.mxu1 %v2367_v31 }
 0x190   : > { %2161 = vmatmul.mubr.msk.bf16.vlgmr.msra.gmra.mxu1 %vm876_vm1, %v2847_v62  ;;  %2163 = vmatmul.mubr.msk.bf16.vlgmr.msra.gmra.mxu0 %vm876_vm1, %v2847_v62 }
 0x191   : > { %1210 = vmatpush1.bf16.msra.mxu1 %v2365_v32  ;;  %1137 = vmatprep.mubr.bf16.mxu1 %v2660_v22 }
 0x192   : > { %1211 = vmatprep.subr.bf16.mxu1 %v2370_v33  ;;  %1190 = vmatprep.mubr.bf16.mxu0 %v2660_v22 }
 0x195   : > { %1212 = vmatpush1.bf16.msra.mxu1 %v2368_v34 }
 0x196   : > { %1213 = vmatprep.subr.bf16.mxu1 %v2373_v35 }
 0x198   : > { %2162 = vmatmul.mubr.msk.bf16.gmra.mxu1 %vm876_vm1, %v2855_v9  ;;  %2164 = vmatmul.mubr.msk.bf16.gmra.mxu0 %vm876_vm1, %v2855_v9 }
 0x199   : > { %1214 = vmatpush1.bf16.msra.mxu1 %v2371_v36  ;;  %1233 = vmatprep.mubr.bf16.mxu1 %v2660_v22 }
 0x19a   : > { %1215 = vmatprep.subr.bf16.mxu1 %v2376_v37 }
 0x19d   : > { %1216 = vmatpush1.bf16.msra.mxu1 %v2374_v38 }
 0x1a0   : > { %2165 = vmatmul.mubr.msk.bf16.vlgmr.msra.gmra.mxu1 %vm876_vm1, %v2847_v62 }
 0x1a1   : > { %1243 = vmatprep.mubr.bf16.mxu1 %v2660_v22  ;;  %v2903_v22 = vrot.slane %v1254_v43, %v2893_v42 }
 0x1a8   : > { %2166 = vmatmul.mubr.msk.bf16.gmra.mxu1 %vm876_vm1, %v2855_v9  ;;  %v2945_v9 = vrot.slane %v1384_v47, %v1284_v51  ;;  %v2997_v47 = vld [vmem:[#allocation10 + $0x8] sm:$0x3f] }
 0x230   : > { %v917_v52 = vpop.f32.mrf.mxu1  ;;  %v970_v54 = vpop.f32.mrf.mxu0 }
 0x231   : > { %v1328_v56 = vmul.f32 %v2900_v46, %v917_v52  ;;  %v1330_v57 = vmul.f32 %v2903_v22, %v970_v54 }
 0x232   : > { %v919_v60 = vpop.f32.mrf.mxu1  ;;  %v972_v62 = vpop.f32.mrf.mxu0 }
 0x233   : > { %v1329_v0 = vmul.f32 %v2906_v48, %v919_v60  ;;  %v1331_v1 = vmul.f32 %v2909_v49, %v972_v62  ;;  %v2937_v4 = vadd.f32 %v2914_v53, %v1328_v56  ;;  %v2940_v5 = vadd.f32 %v2917_v55, %v1330_v57 }
 0x234   : > { %v921_v6 = vpop.f32.mrf.mxu1  ;;  %v974_v7 = vpop.f32.mrf.mxu0 }
 0x235   : > { %v2960_v15 = vadd.f32 %v2924_v61, %v1329_v0  ;;  %v2963_v16 = vadd.f32 %v2927_v63, %v1331_v1  ;;  %v1342_v17 = vmul.f32 %v2900_v46, %v921_v6  ;;  %v1344_v18 = vmul.f32 %v2903_v22, %v974_v7 }
 0x236   : > { %v923_v19 = vpop.f32.mrf.mxu1  ;;  %v976_v20 = vpop.f32.mrf.mxu0  ;;  %v1514_v26 = vmul.f32 0.5, %v2937_v4  ;;  %v1516_v27 = vmul.f32 0.5, %v2940_v5 }
 0x237   : > { %v1343_v21 = vmul.f32 %v2906_v48, %v923_v19  ;;  %v1345_v23 = vmul.f32 %v2909_v49, %v976_v20  ;;  %v2980_v28 = vadd.f32 %v2914_v53, %v1342_v17  ;;  %v2983_v29 = vadd.f32 %v2917_v55, %v1344_v18 }
 0x238   : > { %v927_v30 = vpop.f32.mrf.mxu1  ;;  %v980_v31 = vpop.f32.mrf.mxu0  ;;  %v1515_v36 = vmul.f32 0.5, %v2960_v15  ;;  %v1517_v37 = vmul.f32 0.5, %v2963_v16  ;;  %v3012_v18 = vrot.slane %v2997_v47, %v2891_v41 }
 0x239   : > { %v2986_v32 = vadd.f32 %v2924_v61, %v1343_v21  ;;  %v2989_v33 = vadd.f32 %v2927_v63, %v1345_v23  ;;  %v1356_v34 = vmul.f32 %v2900_v46, %v927_v30  ;;  %v1358_v35 = vmul.f32 %v2903_v22, %v980_v31 }
 0x23a   : > { %v1528_v38 = vmul.f32 0.5, %v2980_v28  ;;  %v1530_v39 = vmul.f32 0.5, %v2983_v29  ;;  %v929_v40 = vpop.f32.mrf.mxu1  ;;  %v982_v43 = vpop.f32.mrf.mxu0  ;;  %3486 = vst [vmem:[#allocation21_spill] sm:$0xff] %v3012_v18 }
 0x23b   : > { %v1529_v51 = vmul.f32 0.5, %v2986_v32  ;;  %v1531_v52 = vmul.f32 0.5, %v2989_v33  ;;  %v3002_v54 = vadd.f32 %v2914_v53, %v1356_v34  ;;  %v3005_v56 = vadd.f32 %v2917_v55, %v1358_v35 }
 0x23c   : > { %v1570_v57 = vpack.c.bf16 %v1528_v38, %v1514_v26  ;;  %v1572_v59 = vpack.c.bf16 %v1530_v39, %v1516_v27  ;;  %v1357_v60 = vmul.f32 %v2906_v48, %v929_v40  ;;  %v1359_v62 = vmul.f32 %v2909_v49, %v982_v43  ;;  %v931_v0 = vpop.f32.mrf.mxu1  ;;  %v984_v1 = vpop.f32.mrf.mxu0 }
 0x23d   : > { %v1571_v6 = vpack.c.bf16 %v1529_v51, %v1515_v36  ;;  %v1573_v7 = vpack.c.bf16 %v1531_v52, %v1517_v37  ;;  %v1542_v17 = vmul.f32 0.5, %v3002_v54  ;;  %v1370_v21 = vmul.f32 %v2900_v46, %v931_v0 }
 0x23e   : > { %2381 = vtanh.bf16 %v1570_v57  ;;  %v3015_v19 = vadd.f32 %v2924_v61, %v1357_v60  ;;  %v3018_v20 = vadd.f32 %v2927_v63, %v1359_v62  ;;  %v933_v23 = vpop.f32.mrf.mxu1  ;;  %v986_v26 = vpop.f32.mrf.mxu0  ;;  %v1372_v27 = vmul.f32 %v2903_v22, %v984_v1 }
 0x23f   : > { %2383 = vtanh.bf16 %v1572_v59  ;;  %v1371_v30 = vmul.f32 %v2906_v48, %v933_v23  ;;  %v1373_v31 = vmul.f32 %v2909_v49, %v986_v26  ;;  %v1544_v41 = vmul.f32 0.5, %v3005_v56 }
 0x240   : > { %2385 = vtanh.bf16 %v1571_v6  ;;  %v1543_v34 = vmul.f32 0.5, %v3015_v19  ;;  %v3027_v35 = vadd.f32 %v2914_v53, %v1370_v21  ;;  %v1023_v36 = vpop.f32.mrf.mxu1  ;;  %v1076_v37 = vpop.f32.mrf.mxu0  ;;  %v3030_v46 = vadd.f32 %v2917_v55, %v1372_v27 }
 0x241   : > { %2387 = vtanh.bf16 %v1573_v7  ;;  %v3033_v22 = vadd.f32 %v2924_v61, %v1371_v30  ;;  %v3036_v48 = vadd.f32 %v2927_v63, %v1373_v31  ;;  %v1545_v49 = vmul.f32 0.5, %v3018_v20 }
 0x242   : > { %v1556_v38 = vmul.f32 0.5, %v3027_v35  ;;  %v1332_v39 = vmul.f32 %v2932_v2, %v1023_v36  ;;  %v1334_v53 = vmul.f32 %v2934_v3, %v1076_v37  ;;  %v1025_v40 = vpop.f32.mrf.mxu1  ;;  %v1078_v43 = vpop.f32.mrf.mxu0  ;;  %v1558_v51 = vmul.f32 0.5, %v3030_v46 }
 0x243   : > { %v1557_v55 = vmul.f32 0.5, %v3033_v22  ;;  %v1559_v61 = vmul.f32 0.5, %v3036_v48  ;;  %v1333_v52 = vmul.f32 %v2950_v11, %v1025_v40  ;;  %v1335_v59 = vmul.f32 %v2955_v13, %v1078_v43 }
 0x244   : > { %v1584_v63 = vpack.c.bf16 %v1556_v38, %v1542_v17  ;;  %v3047_v57 = vadd.f32 %v2943_v8, %v1332_v39  ;;  %v1027_v60 = vpop.f32.mrf.mxu1  ;;  %v1080_v62 = vpop.f32.mrf.mxu0  ;;  %v3052_v0 = vrot.slane %v2997_v47, %v2893_v42  ;;  %v1586_v1 = vpack.c.bf16 %v1558_v51, %v1544_v41 }
 0x245   : > { %v1585_v6 = vpack.c.bf16 %v1557_v55, %v1543_v34  ;;  %v1587_v7 = vpack.c.bf16 %v1559_v61, %v1545_v49  ;;  %v3056_v21 = vrot.slane %v2947_v10, %v2895_v44  ;;  %v3059_v17 = vadd.f32 %v2945_v9, %v1334_v53 }
 0x246   : > { %3487 = vst [vmem:[#allocation22_spill] sm:$0xff] %v3047_v57  ;;  %3488 = vst [vmem:[#allocation23_spill] sm:$0xff] %v3052_v0  ;;  %2389 = vtanh.bf16 %v1584_v63  ;;  %v3062_v23 = vadd.f32 %v2953_v12, %v1333_v52  ;;  %v1029_v26 = vpop.f32.mrf.mxu1  ;;  %v1082_v27 = vpop.f32.mrf.mxu0  ;;  %v3066_v42 = vrot.slane %v2947_v10, %v2897_v45  ;;  %v3069_v30 = vadd.f32 %v2957_v14, %v1335_v59 }
 0x247   : > { %3489 = vst [vmem:[#allocation24_spill] sm:$0xff] %v3056_v21  ;;  %3490 = vst [vmem:[#allocation25_spill] sm:$0xff] %v3059_v17  ;;  %2391 = vtanh.bf16 %v1586_v1  ;;  %v1346_v31 = vmul.f32 %v2932_v2, %v1027_v60  ;;  %v1348_v41 = vmul.f32 %v2934_v3, %v1080_v62  ;;  %v3074_v34 = vmul.f32 0.5, %v3047_v57 }
 0x248   : > { %3491 = vst [vmem:[#allocation26_spill] sm:$0xff] %v3062_v23  ;;  %3492 = vst [vmem:[#allocation27_spill] sm:$0xff] %v3066_v42  ;;  %2393 = vtanh.bf16 %v1585_v6  ;;  %v1347_v36 = vmul.f32 %v2950_v11, %v1029_v26  ;;  %v1349_v37 = vmul.f32 %v2955_v13, %v1082_v27  ;;  %v1033_v49 = vpop.f32.mrf.mxu1  ;;  %v1086_v38 = vpop.f32.mrf.mxu0  ;;  %v3086_v43 = vmul.f32 0.5, %v3059_v17 }
 0x249   : > { %3493 = vst [vmem:[#allocation28_spill] sm:$0xff] %v3069_v30  ;;  %2395 = vtanh.bf16 %v1587_v7  ;;  %v3079_v39 = vadd.f32 %v2943_v8, %v1346_v31  ;;  %v3082_v53 = vadd.f32 %v2945_v9, %v1348_v41  ;;  %v1360_v40 = vmul.f32 %v2932_v2, %v1033_v49 }
 0x24a   : > { %v3089_v51 = vmul.f32 0.5, %v3062_v23  ;;  %v3092_v55 = vadd.f32 %v2953_v12, %v1347_v36  ;;  %v3095_v61 = vadd.f32 %v2957_v14, %v1349_v37  ;;  %v1035_v52 = vpop.f32.mrf.mxu1  ;;  %v1088_v63 = vpop.f32.mrf.mxu0  ;;  %v3098_v59 = vmul.f32 0.5, %v3069_v30 }
 0x24b   : > { %3494 = vst [vmem:[#allocation29_spill] sm:$0xff] %v3079_v39  ;;  %3495 = vst [vmem:[#allocation30_spill] sm:$0xff] %v3082_v53  ;;  %v3101_v60 = vmul.f32 0.5, %v3079_v39  ;;  %v3104_v62 = vmul.f32 0.5, %v3082_v53  ;;  %v3107_v1 = vmul.f32 %v2934_v3, %v1086_v38  ;;  %v3116_v27 = vadd.f32 %v2943_v8, %v1360_v40 }
 0x24c   : > { %3496 = vst [vmem:[#allocation31_spill] sm:$0xff] %v3092_v55  ;;  %3497 = vst [vmem:[#allocation32_spill] sm:$0xff] %v3095_v61  ;;  %v2382_v6 = vpop.eup %2381  ;;  %v3110_v7 = vmul.f32 0.5, %v3092_v55  ;;  %v3113_v26 = vmul.f32 0.5, %v3095_v61  ;;  %v3119_v31 = vmul.f32 %v2950_v11, %v1035_v52  ;;  %v3124_v38 = vmul.f32 %v2955_v13, %v1088_v63  ;;  %v3132_v25 = vpop.f32.mrf.mxu1 }
 0x24d   : > { %v2384_v41 = vpop.eup %2383  ;;  %v1626_v36 = vunpack.c.l.bf16 %v2382_v6  ;;  %v1640_v37 = vunpack.c.h.bf16 %v2382_v6 }
 0x24e   : > { %v2386_v58 = vpop.eup %2385  ;;  %v1628_v10 = vunpack.c.l.bf16 %v2384_v41  ;;  %v1642_v50 = vunpack.c.h.bf16 %v2384_v41 }
 0x24f   : > { %v2388_v52 = vpop.eup %2387  ;;  %v1682_v30 = vadd.f32 1.0, %v1626_v36  ;;  %v1696_v55 = vadd.f32 1.0, %v1640_v37  ;;  %v1627_v23 = vunpack.c.l.bf16 %v2386_v58  ;;  %v1641_v6 = vunpack.c.h.bf16 %v2386_v58 }
 0x250   : > { %v1684_v53 = vadd.f32 1.0, %v1628_v10  ;;  %v1698_v17 = vadd.f32 1.0, %v1642_v50  ;;  %v1629_v49 = vunpack.c.l.bf16 %v2388_v52  ;;  %v1643_v39 = vunpack.c.h.bf16 %v2388_v52  ;;  %v3142_v52 = vpop.f32.mrf.mxu1 }
 0x251   : > { %v1738_v63 = vmul.f32 0.5, %v1682_v30  ;;  %v1752_v57 = vmul.f32 0.5, %v1696_v55  ;;  %v1683_v0 = vadd.f32 1.0, %v1627_v23  ;;  %v1697_v18 = vadd.f32 1.0, %v1641_v6 }
 0x252   : > { %v1740_v41 = vmul.f32 0.5, %v1684_v53  ;;  %v1754_v45 = vmul.f32 0.5, %v1698_v17  ;;  %v1685_v42 = vadd.f32 1.0, %v1629_v49  ;;  %v1699_v61 = vadd.f32 1.0, %v1643_v39 }
 0x253   : > { %v1794_v21 = vmul.f32 %v1738_v63, %v2937_v4  ;;  %v1808_v40 = vmul.f32 %v1752_v57, %v2980_v28  ;;  %v1739_v36 = vmul.f32 0.5, %v1683_v0  ;;  %v1753_v37 = vmul.f32 0.5, %v1697_v18 }
 0x254   : > { %v2390_v58 = vpop.eup %2389  ;;  %v1796_v50 = vmul.f32 %v1740_v41, %v2940_v5  ;;  %v1810_v10 = vmul.f32 %v1754_v45, %v2983_v29  ;;  %v1741_v30 = vmul.f32 0.5, %v1685_v42  ;;  %v1755_v23 = vmul.f32 0.5, %v1699_v61 }
 0x255   : > { %v2392_v55 = vpop.eup %2391  ;;  %v1795_v17 = vmul.f32 %v1739_v36, %v2960_v15  ;;  %v1809_v39 = vmul.f32 %v1753_v37, %v2986_v32  ;;  %v1654_v53 = vunpack.c.l.bf16 %v2390_v58  ;;  %v1577_v4 = vpack.c.bf16 %v3113_v26, %v3098_v59 }
 0x256   : > { %v2394_v28 = vpop.eup %2393  ;;  %v1864_v18 = vadd.f32 %v1808_v40, %v1794_v21  ;;  %v1870_v57 = vadd.f32 %v1810_v10, %v1796_v50  ;;  %v1797_v0 = vmul.f32 %v1741_v30, %v2963_v16  ;;  %v1668_v49 = vunpack.c.h.bf16 %v2390_v58  ;;  %v1090_v40 = vpop.f32.mrf.mxu0 }
 0x257   : > { %v2396_v5 = vpop.eup %2395  ;;  %v1811_v45 = vmul.f32 %v1755_v23, %v2989_v33  ;;  %v1710_v29 = vadd.f32 1.0, %v1654_v53  ;;  %v1656_v42 = vunpack.c.l.bf16 %v2392_v55  ;;  %v1670_v61 = vunpack.c.h.bf16 %v2392_v55  ;;  %v1129_v23 = vpop.f32.mrf.mxu1 }
 0x258   : > { %v1867_v15 = vadd.f32 %v1809_v39, %v1795_v17  ;;  %v1724_v32 = vadd.f32 1.0, %v1668_v49  ;;  %v1655_v6 = vunpack.c.l.bf16 %v2394_v28  ;;  %v1669_v63 = vunpack.c.h.bf16 %v2394_v28 }
 0x259   : > { %v1766_v41 = vmul.f32 0.5, %v1710_v29  ;;  %v1712_v59 = vadd.f32 1.0, %v1656_v42  ;;  %v1726_v26 = vadd.f32 1.0, %v1670_v61  ;;  %v1657_v21 = vunpack.c.l.bf16 %v2396_v5  ;;  %v1092_v61 = vpop.f32.mrf.mxu0 }
 0x25a   : > { %v1780_v36 = vmul.f32 0.5, %v1724_v32  ;;  %v1711_v16 = vadd.f32 1.0, %v1655_v6  ;;  %v1725_v37 = vadd.f32 1.0, %v1669_v63  ;;  %v1671_v58 = vunpack.c.h.bf16 %v2396_v5  ;;  %v1850_v32 = vld [vmem:[%s2825_s12] sm:$0xff] }
 0x25b   : > { %v1822_v33 = vmul.f32 %v1766_v41, %v3002_v54  ;;  %v1768_v50 = vmul.f32 0.5, %v1712_v59  ;;  %v1782_v10 = vmul.f32 0.5, %v1726_v26  ;;  %v1713_v30 = vadd.f32 1.0, %v1657_v21  ;;  %v1852_v41 = vld [vmem:[%s2825_s12 + $0x10] sm:$0xff]  ;;  %v1851_v26 = vld [vmem:[%s2825_s12 + $0x8] sm:$0xff]  ;;  %v1182_v21 = vpop.f32.mrf.mxu0 }
 0x25c   : > { %v1873_v55 = vadd.f32 %v1811_v45, %v1797_v0  ;;  %v1767_v17 = vmul.f32 0.5, %v1711_v16  ;;  %v1781_v39 = vmul.f32 0.5, %v1725_v37  ;;  %v1727_v53 = vadd.f32 1.0, %v1671_v58 }
 0x25d   : > { %v1836_v28 = vmul.f32 %v1780_v36, %v3027_v35  ;;  %v1865_v49 = vadd.f32 %v1864_v18, %v1822_v33  ;;  %v1824_v29 = vmul.f32 %v1768_v50, %v3005_v56  ;;  %v1769_v42 = vmul.f32 0.5, %v1713_v30  ;;  %v1131_v18 = vpop.f32.mrf.mxu1 }
 0x25e   : > { %v1838_v5 = vmul.f32 %v1782_v10, %v3030_v46  ;;  %v1823_v54 = vmul.f32 %v1767_v17, %v3015_v19  ;;  %v1783_v6 = vmul.f32 0.5, %v1727_v53  ;;  %v3498_v0 = vpack.c.bf16 %v3101_v60, %v3074_v34 }
 0x25f   : > { %v1866_v45 = vadd.f32 %v1865_v49, %v1836_v28  ;;  %v1871_v63 = vadd.f32 %v1870_v57, %v1824_v29  ;;  %v1825_v35 = vmul.f32 %v1769_v42, %v3018_v20  ;;  %v3499_v56 = vpack.c.bf16 %v3104_v62, %v3086_v43  ;;  %v1853_v62 = vld [vmem:[%s2825_s12 + $0x18] sm:$0xff]  ;;  %v1133_v16 = vpop.f32.mrf.mxu1 }
 0x260   : > { %2397 = vtanh.bf16 %v3498_v0  ;;  %v1837_v46 = vmul.f32 %v1781_v39, %v3033_v22  ;;  %v1868_v19 = vadd.f32 %v1867_v15, %v1823_v54  ;;  %v1839_v59 = vmul.f32 %v1783_v6, %v3036_v48  ;;  %v3503_v39 = vld [vmem:[#allocation27_spill] sm:$0xff] }
 0x261   : > { %2399 = vtanh.bf16 %v3499_v56  ;;  %v3500_v34 = vpack.c.bf16 %v3110_v7, %v3089_v51  ;;  %v1906_v60 = vadd.f32 %v1866_v45, %v1850_v32  ;;  %v1872_v57 = vadd.f32 %v1871_v63, %v1838_v5  ;;  %v3505_v5 = vld [vmem:[#allocation21_spill] sm:$0xff]  ;;  %v3506_v6 = vld [vmem:[#allocation23_spill] sm:$0xff] }
 0x262   : > { %v1874_v20 = vadd.f32 %v1873_v55, %v1825_v35  ;;  %v1869_v43 = vadd.f32 %v1868_v19, %v1837_v46  ;;  %v1546_v36 = vmul.f32 0.5, %v3116_v27  ;;  %v3168_v22 = vadd.f32 %v2945_v9, %v3107_v1  ;;  %v1135_v55 = vpop.f32.mrf.mxu1 }
 0x263   : > { %2401 = vtanh.bf16 %v3500_v34  ;;  %v3172_v48 = vrot.slane %v2997_v47, %v2895_v44  ;;  %1920 = vst [vmem:[%s2825_s12] sm:$0xff] %v1906_v60  ;;  %v1908_v51 = vadd.f32 %v1872_v57, %v1852_v41  ;;  %v1376_v15 = vmul.f32 %v2934_v3, %v1090_v40  ;;  %v1184_v40 = vpop.f32.mrf.mxu0 }
 0x264   : > { %2403 = vtanh.bf16 %v1577_v4  ;;  %v1875_v7 = vadd.f32 %v1874_v20, %v1839_v59  ;;  %v1374_v4 = vmul.f32 %v2932_v2, %v3132_v25  ;;  %v1907_v37 = vadd.f32 %v1869_v43, %v1851_v26  ;;  %v3229_v56 = vpop.f32.mrf.mxu1 }
 0x265   : > { %v3180_v1 = vadd.f32 %v2953_v12, %v3119_v31  ;;  %v3184_v44 = vadd.f32 %v2957_v14, %v3124_v38  ;;  %v1375_v58 = vmul.f32 %v2950_v11, %v3142_v52  ;;  %1922 = vst [vmem:[%s2825_s12 + $0x10] sm:$0xff] %v1908_v51  ;;  %v3193_v3 = vadd.f32 %v2945_v9, %v1376_v15  ;;  %v3501_v11 = vld [vmem:[#allocation20_spill] sm:$0xff] }
 0x266   : > { %v1909_v33 = vadd.f32 %v1875_v7, %v1853_v62  ;;  %v3190_v2 = vadd.f32 %v2943_v8, %v1374_v4  ;;  %v1377_v25 = vmul.f32 %v2955_v13, %v1092_v61  ;;  %1921 = vst [vmem:[%s2825_s12 + $0x8] sm:$0xff] %v1907_v37  ;;  %v1548_v31 = vmul.f32 0.5, %v3168_v22  ;;  %v3502_v13 = vld [vmem:[#allocation24_spill] sm:$0xff]  ;;  %v1186_v61 = vpop.f32.mrf.mxu0  ;;  %v3242_v15 = vpop.f32.mrf.mxu1 }
 0x267   : > { %v3199_v38 = vadd.f32 %v2953_v12, %v1375_v58  ;;  %v1336_v50 = vmul.f32 %v2971_v24, %v1129_v23  ;;  %v1338_v52 = vmul.f32 %v3501_v11, %v1182_v21  ;;  %v1562_v10 = vmul.f32 0.5, %v3193_v3  ;;  %v3504_v23 = vld [vmem:[#allocation16_spill] sm:$0xff] }
 0x268   : > { %1923 = vst [vmem:[%s2825_s12 + $0x18] sm:$0xff] %v1909_v33  ;;  %v1560_v8 = vmul.f32 0.5, %v3190_v2  ;;  %v3207_v9 = vadd.f32 %v2957_v14, %v1377_v25  ;;  %v1337_v30 = vmul.f32 %v3502_v13, %v1131_v18  ;;  %v1547_v17 = vmul.f32 0.5, %v3180_v1  ;;  %v1188_v25 = vpop.f32.mrf.mxu0 }
 0x269   : > { %v1561_v12 = vmul.f32 0.5, %v3199_v38  ;;  %v1339_v53 = vmul.f32 %v3503_v39, %v1184_v40  ;;  %v3215_v28 = vrot.slane %v2997_v47, %v3504_v23  ;;  %v1549_v49 = vmul.f32 0.5, %v3184_v44 }
 0x26a   : > { %v1588_v29 = vpack.c.bf16 %v1560_v8, %v1546_v36  ;;  %v1590_v42 = vpack.c.bf16 %v1562_v10, %v1548_v31  ;;  %v1563_v14 = vmul.f32 0.5, %v3207_v9  ;;  %v3220_v54 = vadd.f32 %v3505_v5, %v1336_v50 }
 0x26b   : > { %v1589_v32 = vpack.c.bf16 %v1561_v12, %v1547_v17  ;;  %v3223_v0 = vadd.f32 %v3506_v6, %v1338_v52  ;;  %v3226_v63 = vadd.f32 %v3172_v48, %v1337_v30  ;;  %v1350_v35 = vmul.f32 %v2971_v24, %v1133_v16  ;;  %v3507_v17 = vld [vmem:[#allocation22_spill] sm:$0xff] }
 0x26c   : > { %2405 = vtanh.bf16 %v1588_v29  ;;  %v1591_v45 = vpack.c.bf16 %v1563_v14, %v1549_v49  ;;  %v3232_v41 = vadd.f32 %v3215_v28, %v1339_v53  ;;  %v1352_v46 = vmul.f32 %v3501_v11, %v1186_v61  ;;  %v3246_v29 = vpop.f32.mrf.mxu1  ;;  %v3509_v61 = vld [vmem:[#allocation25_spill] sm:$0xff] }
 0x26d   : > { %2407 = vtanh.bf16 %v1590_v42  ;;  %v1351_v19 = vmul.f32 %v3502_v13, %v1135_v55  ;;  %v3237_v57 = vadd.f32 %v3505_v5, %v1350_v35  ;;  %v1353_v49 = vmul.f32 %v3503_v39, %v1188_v25  ;;  %v3508_v42 = vld [vmem:[#allocation29_spill] sm:$0xff] }
 0x26e   : > { %v2398_v18 = vpop.eup %2397  ;;  %2409 = vtanh.bf16 %v1589_v32  ;;  %v3240_v43 = vadd.f32 %v3506_v6, %v1352_v46 }
 0x26f   : > { %v2400_v59 = vpop.eup %2399  ;;  %v1630_v34 = vunpack.c.l.bf16 %v2398_v18  ;;  %v1644_v60 = vunpack.c.h.bf16 %v2398_v18  ;;  %2411 = vtanh.bf16 %v1591_v45  ;;  %v3510_v45 = vld [vmem:[#allocation30_spill] sm:$0xff] }
 0x270   : > { %v1632_v20 = vunpack.c.l.bf16 %v2400_v59  ;;  %v1646_v21 = vunpack.c.h.bf16 %v2400_v59  ;;  %v1522_v59 = vmul.f32 0.5, %v3220_v54 }
 0x271   : > { %v2402_v26 = vpop.eup %2401  ;;  %v1686_v36 = vadd.f32 1.0, %v1630_v34  ;;  %v1700_v51 = vadd.f32 1.0, %v1644_v60  ;;  %v1524_v34 = vmul.f32 0.5, %v3223_v0  ;;  %v1536_v60 = vmul.f32 0.5, %v3237_v57 }
 0x272   : > { %v2404_v62 = vpop.eup %2403  ;;  %v1631_v7 = vunpack.c.l.bf16 %v2402_v26  ;;  %v1645_v4 = vunpack.c.h.bf16 %v2402_v26  ;;  %v1688_v16 = vadd.f32 1.0, %v1632_v20  ;;  %v1702_v37 = vadd.f32 1.0, %v1646_v21  ;;  %v3511_v26 = vld [vmem:[#allocation26_spill] sm:$0xff]  ;;  %v3512_v21 = vld [vmem:[#allocation31_spill] sm:$0xff] }
 0x273   : > { %v1633_v58 = vunpack.c.l.bf16 %v2404_v62  ;;  %v1647_v33 = vunpack.c.h.bf16 %v2404_v62  ;;  %v1742_v40 = vmul.f32 0.5, %v1686_v36  ;;  %v1756_v31 = vmul.f32 0.5, %v1700_v51 }
 0x274   : > { %v1687_v50 = vadd.f32 1.0, %v1631_v7  ;;  %v1701_v52 = vadd.f32 1.0, %v1645_v4  ;;  %v1744_v8 = vmul.f32 0.5, %v1688_v16  ;;  %v1758_v10 = vmul.f32 0.5, %v1702_v37 }
 0x275   : > { %v1689_v30 = vadd.f32 1.0, %v1633_v58  ;;  %v1703_v55 = vadd.f32 1.0, %v1647_v33  ;;  %v1798_v12 = vmul.f32 %v1742_v40, %v3507_v17  ;;  %v1812_v14 = vmul.f32 %v1756_v31, %v3508_v42  ;;  %v3265_v58 = vpop.f32.mrf.mxu1  ;;  %v3513_v40 = vld [vmem:[#allocation28_spill] sm:$0xff] }
 0x276   : > { %v1743_v53 = vmul.f32 0.5, %v1687_v50  ;;  %v1757_v23 = vmul.f32 0.5, %v1701_v52  ;;  %v1800_v32 = vmul.f32 %v1744_v8, %v3509_v61  ;;  %v1814_v35 = vmul.f32 %v1758_v10, %v3510_v45  ;;  %v3514_v8 = vld [vmem:[#allocation32_spill] sm:$0xff] }
 0x277   : > { %v1745_v18 = vmul.f32 0.5, %v1689_v30  ;;  %v1759_v46 = vmul.f32 0.5, %v1703_v55  ;;  %v1523_v36 = vmul.f32 0.5, %v3226_v63  ;;  %v1538_v51 = vmul.f32 0.5, %v3240_v43 }
 0x278   : > { %v1799_v20 = vmul.f32 %v1743_v53, %v3511_v26  ;;  %v1813_v62 = vmul.f32 %v1757_v23, %v3512_v21  ;;  %v1525_v7 = vmul.f32 0.5, %v3232_v41  ;;  %v1578_v4 = vpack.c.bf16 %v1536_v60, %v1522_v59 }
 0x279   : > { %v3260_v16 = vadd.f32 %v3172_v48, %v1351_v19  ;;  %v3263_v37 = vadd.f32 %v3215_v28, %v1353_v49  ;;  %v1876_v33 = vadd.f32 %v1812_v14, %v1798_v12  ;;  %v1882_v25 = vadd.f32 %v1814_v35, %v1800_v32  ;;  %v3271_v32 = vpop.f32.mrf.mxu1 }
 0x27a   : > { %v1801_v31 = vmul.f32 %v1745_v18, %v3513_v40  ;;  %v1580_v50 = vpack.c.bf16 %v1538_v51, %v1524_v34  ;;  %v2406_v52 = vpop.eup %2405  ;;  %v1815_v10 = vmul.f32 %v1759_v46, %v3514_v8  ;;  %2413 = vtanh.bf16 %v1578_v4  ;;  %v1192_v34 = vpop.f32.mrf.mxu0 }
 0x27b   : > { %v1537_v30 = vmul.f32 0.5, %v3260_v16  ;;  %v1539_v55 = vmul.f32 0.5, %v3263_v37  ;;  %v2408_v19 = vpop.eup %2407  ;;  %v1879_v17 = vadd.f32 %v1813_v62, %v1799_v20  ;;  %v1658_v53 = vunpack.c.l.bf16 %v2406_v52  ;;  %v3273_v8 = vpop.f32.mrf.mxu1 }
 0x27c   : > { %v1672_v23 = vunpack.c.h.bf16 %v2406_v52  ;;  %2415 = vtanh.bf16 %v1580_v50  ;;  %v2410_v49 = vpop.eup %2409  ;;  %v1660_v42 = vunpack.c.l.bf16 %v2408_v19  ;;  %v1674_v12 = vunpack.c.h.bf16 %v2408_v19 }
 0x27d   : > { %v1579_v14 = vpack.c.bf16 %v1537_v30, %v1523_v36  ;;  %v1581_v61 = vpack.c.bf16 %v1539_v55, %v1525_v7  ;;  %v2412_v45 = vpop.eup %2411  ;;  %v1714_v35 = vadd.f32 1.0, %v1658_v53  ;;  %v1659_v46 = vunpack.c.l.bf16 %v2410_v49 }
 0x27e   : > { %v1728_v18 = vadd.f32 1.0, %v1672_v23  ;;  %v1673_v59 = vunpack.c.h.bf16 %v2410_v49  ;;  %v1716_v60 = vadd.f32 1.0, %v1660_v42  ;;  %v1730_v26 = vadd.f32 1.0, %v1674_v12  ;;  %v1194_v23 = vpop.f32.mrf.mxu0 }
 0x27f   : > { %v1661_v21 = vunpack.c.l.bf16 %v2412_v45  ;;  %v1675_v20 = vunpack.c.h.bf16 %v2412_v45  ;;  %v1770_v62 = vmul.f32 0.5, %v1714_v35  ;;  %v1715_v4 = vadd.f32 1.0, %v1659_v46 }
 0x280   : > { %v1784_v51 = vmul.f32 0.5, %v1728_v18  ;;  %v1729_v40 = vadd.f32 1.0, %v1673_v59  ;;  %v1772_v50 = vmul.f32 0.5, %v1716_v60  ;;  %v1786_v52 = vmul.f32 0.5, %v1730_v26  ;;  %v1856_v26 = vld [vmem:[%s2825_s12 + $0x30] sm:$0xff] }
 0x281   : > { %v1717_v36 = vadd.f32 1.0, %v1661_v21  ;;  %v1731_v7 = vadd.f32 1.0, %v1675_v20  ;;  %v1885_v30 = vadd.f32 %v1815_v10, %v1801_v31  ;;  %v1826_v55 = vmul.f32 %v1770_v62, %v3116_v27  ;;  %v1854_v31 = vld [vmem:[%s2825_s12 + $0x20] sm:$0xff]  ;;  %v1196_v21 = vpop.f32.mrf.mxu0  ;;  %v1855_v20 = vld [vmem:[%s2825_s12 + $0x28] sm:$0xff] }
 0x282   : > { %v1771_v19 = vmul.f32 0.5, %v1715_v4  ;;  %v1785_v53 = vmul.f32 0.5, %v1729_v40  ;;  %v1828_v49 = vmul.f32 %v1772_v50, %v3168_v22  ;;  %v1364_v45 = vmul.f32 %v2971_v24, %v3229_v56  ;;  %v3284_v22 = vpop.f32.mrf.mxu1  ;;  %v3515_v40 = vld [vmem:[#allocation17_spill] sm:$0xff]  ;;  %v3516_v50 = vld [vmem:[#allocation19_spill] sm:$0xff] }
 0x283   : > { %v1773_v42 = vmul.f32 0.5, %v1717_v36  ;;  %v1787_v12 = vmul.f32 0.5, %v1731_v7  ;;  %v1840_v35 = vmul.f32 %v1784_v51, %v3190_v2  ;;  %v1877_v18 = vadd.f32 %v1876_v33, %v1826_v55  ;;  %v1198_v55 = vpop.f32.mrf.mxu0 }
 0x284   : > { %v1827_v46 = vmul.f32 %v1771_v19, %v3180_v1  ;;  %2417 = vtanh.bf16 %v1579_v14  ;;  %v1842_v27 = vmul.f32 %v1786_v52, %v3193_v3  ;;  %v1883_v10 = vadd.f32 %v1882_v25, %v1828_v49  ;;  %v3303_v36 = vpop.f32.mrf.mxu1 }
 0x285   : > { %v1829_v59 = vmul.f32 %v1773_v42, %v3184_v44  ;;  %2419 = vtanh.bf16 %v1581_v61  ;;  %v1878_v60 = vadd.f32 %v1877_v18, %v1840_v35  ;;  %v1841_v56 = vmul.f32 %v1785_v53, %v3199_v38  ;;  %v1857_v61 = vld [vmem:[%s2825_s12 + $0x38] sm:$0xff] }
 0x286   : > { %v1880_v2 = vadd.f32 %v1879_v17, %v1827_v46  ;;  %v1884_v33 = vadd.f32 %v1883_v10, %v1842_v27  ;;  %v1843_v1 = vmul.f32 %v1787_v12, %v3207_v9  ;;  %v3291_v3 = vadd.f32 %v3505_v5, %v1364_v45  ;;  %v3517_v46 = vld [vmem:[#allocation18_spill] sm:$0xff]  ;;  %v1245_v27 = vpop.f32.mrf.mxu1 }
 0x287   : > { %v1886_v14 = vadd.f32 %v1885_v30, %v1829_v59  ;;  %v1910_v25 = vadd.f32 %v1878_v60, %v1854_v31  ;;  %v1366_v62 = vmul.f32 %v3501_v11, %v1192_v34  ;;  %v1378_v38 = vmul.f32 %v2971_v24, %v3246_v29 }
 0x288   : > { %v1881_v44 = vadd.f32 %v1880_v2, %v1841_v56  ;;  %v2414_v17 = vpop.eup %2413  ;;  %v1912_v51 = vadd.f32 %v1884_v33, %v1856_v26  ;;  %v1365_v9 = vmul.f32 %v3502_v13, %v3242_v15  ;;  %v3301_v52 = vrot.slane %v3516_v50, %v3515_v40 }
 0x289   : > { %v1887_v4 = vadd.f32 %v1886_v14, %v1843_v1  ;;  %1924 = vst [vmem:[%s2825_s12 + $0x20] sm:$0xff] %v1910_v25  ;;  %v1634_v30 = vunpack.c.l.bf16 %v2414_v17  ;;  %v1367_v24 = vmul.f32 %v3503_v39, %v1194_v23  ;;  %v3308_v29 = vadd.f32 %v3505_v5, %v1378_v38 }
 0x28a   : > { %v2416_v7 = vpop.eup %2415  ;;  %v1911_v34 = vadd.f32 %v1881_v44, %v1855_v20  ;;  %1926 = vst [vmem:[%s2825_s12 + $0x30] sm:$0xff] %v1912_v51  ;;  %v1648_v15 = vunpack.c.h.bf16 %v2414_v17  ;;  %v1550_v49 = vmul.f32 0.5, %v3291_v3  ;;  %v3314_v12 = vadd.f32 %v3506_v6, %v1366_v62 }
 0x28b   : > { %v1913_v19 = vadd.f32 %v1887_v4, %v1857_v61  ;;  %v1636_v53 = vunpack.c.l.bf16 %v2416_v7  ;;  %v1650_v42 = vunpack.c.h.bf16 %v2416_v7  ;;  %v1564_v45 = vmul.f32 0.5, %v3308_v29 }
 0x28c   : > { %1925 = vst [vmem:[%s2825_s12 + $0x28] sm:$0xff] %v1911_v34  ;;  %v1380_v35 = vmul.f32 %v3501_v11, %v1196_v21  ;;  %v3320_v5 = vadd.f32 %v3172_v48, %v1365_v9  ;;  %v1379_v23 = vmul.f32 %v3502_v13, %v3265_v58  ;;  %v1381_v18 = vmul.f32 %v3503_v39, %v1198_v55 }
 0x28d   : > { %1927 = vst [vmem:[%s2825_s12 + $0x38] sm:$0xff] %v1913_v19  ;;  %v3327_v31 = vrot.slane %v3516_v50, %v3517_v46  ;;  %v1690_v10 = vadd.f32 1.0, %v1634_v30  ;;  %v3330_v59 = vadd.f32 %v3215_v28, %v1367_v24  ;;  %v1592_v60 = vpack.c.bf16 %v1564_v45, %v1550_v49 }
 0x28e   : > { %v3333_v11 = vadd.f32 %v3506_v6, %v1380_v35  ;;  %v1704_v26 = vadd.f32 1.0, %v1648_v15  ;;  %v1692_v56 = vadd.f32 1.0, %v1636_v53  ;;  %v3336_v2 = vadd.f32 %v3172_v48, %v1379_v23  ;;  %v1247_v48 = vpop.f32.mrf.mxu1 }
 0x28f   : > { %v3339_v13 = vadd.f32 %v3215_v28, %v1381_v18  ;;  %v1706_v39 = vadd.f32 1.0, %v1650_v42  ;;  %v1552_v58 = vmul.f32 0.5, %v3314_v12  ;;  %2421 = vtanh.bf16 %v1592_v60 }
 0x290   : > { %v1566_v21 = vmul.f32 0.5, %v3333_v11  ;;  %v1551_v33 = vmul.f32 0.5, %v3320_v5  ;;  %v1565_v20 = vmul.f32 0.5, %v3336_v2  ;;  %v1439_v1 = vrot.slane %v2997_v47, %v3515_v40  ;;  %v1249_v30 = vpop.f32.mrf.mxu1 }
 0x291   : > { %v1567_v6 = vmul.f32 0.5, %v3339_v13  ;;  %v1746_v25 = vmul.f32 0.5, %v1690_v10  ;;  %v1553_v28 = vmul.f32 0.5, %v3330_v59  ;;  %v1443_v61 = vrot.slane %v2997_v47, %v3517_v46 }
 0x292   : > { %v2418_v14 = vpop.eup %2417  ;;  %v1594_v44 = vpack.c.bf16 %v1566_v21, %v1552_v58  ;;  %v1760_v38 = vmul.f32 0.5, %v1704_v26  ;;  %v1748_v17 = vmul.f32 0.5, %v1692_v56  ;;  %v1593_v51 = vpack.c.bf16 %v1565_v20, %v1551_v33  ;;  %v1251_v23 = vpop.f32.mrf.mxu1 }
 0x293   : > { %v2420_v62 = vpop.eup %2419  ;;  %v1340_v4 = vmul.f32 %v3301_v52, %v3271_v32  ;;  %v1762_v9 = vmul.f32 0.5, %v1706_v39  ;;  %v1595_v50 = vpack.c.bf16 %v1567_v6, %v1553_v28  ;;  %v1341_v40 = vmul.f32 %v3327_v31, %v3273_v8 }
 0x294   : > { %2423 = vtanh.bf16 %v1594_v44  ;;  %v1635_v7 = vunpack.c.l.bf16 %v2418_v14  ;;  %v1649_v34 = vunpack.c.h.bf16 %v2418_v14  ;;  %v1637_v24 = vunpack.c.l.bf16 %v2420_v62 }
 0x295   : > { %2425 = vtanh.bf16 %v1593_v51  ;;  %v1651_v55 = vunpack.c.h.bf16 %v2420_v62  ;;  %v1802_v47 = vmul.f32 %v1746_v25, %v3220_v54  ;;  %v1816_v19 = vmul.f32 %v1760_v38, %v3237_v57 }
 0x296   : > { %2427 = vtanh.bf16 %v1595_v50  ;;  %v3357_v15 = vadd.f32 %v1439_v1, %v1340_v4  ;;  %v1354_v32 = vmul.f32 %v3301_v52, %v3284_v22  ;;  %v3362_v53 = vmul.f32 %v1748_v17, %v3223_v0 }
 0x297   : > { %v3365_v8 = vmul.f32 %v1762_v9, %v3240_v43  ;;  %v3367_v49 = vadd.f32 %v1443_v61, %v1341_v40  ;;  %v1355_v42 = vmul.f32 %v3327_v31, %v3303_v36  ;;  %v1691_v45 = vadd.f32 1.0, %v1635_v7 }
 0x298   : > { %v1705_v54 = vadd.f32 1.0, %v1649_v34  ;;  %v3371_v35 = vadd.f32 %v1439_v1, %v1354_v32  ;;  %v1368_v57 = vmul.f32 %v3301_v52, %v1245_v27  ;;  %v1693_v18 = vadd.f32 1.0, %v1637_v24 }
 0x299   : > { %v1707_v22 = vadd.f32 1.0, %v1651_v55  ;;  %v3374_v46 = vadd.f32 %v1443_v61, %v1355_v42  ;;  %v1369_v0 = vmul.f32 %v3327_v31, %v1247_v48  ;;  %v1526_v43 = vmul.f32 0.5, %v3357_v15 }
 0x29a   : > { %v1540_v10 = vmul.f32 0.5, %v3371_v35  ;;  %v3379_v60 = vadd.f32 %v1439_v1, %v1368_v57  ;;  %v1382_v36 = vmul.f32 %v3301_v52, %v1249_v30  ;;  %v1527_v26 = vmul.f32 0.5, %v3367_v49 }
 0x29b   : > { %v1541_v56 = vmul.f32 0.5, %v3374_v46  ;;  %v3384_v27 = vadd.f32 %v1443_v61, %v1369_v0  ;;  %v1383_v39 = vmul.f32 %v3327_v31, %v1251_v23  ;;  %v1747_v58 = vmul.f32 0.5, %v1691_v45 }
 0x29c   : > { %v1761_v21 = vmul.f32 0.5, %v1705_v54  ;;  %v1582_v33 = vpack.c.bf16 %v1540_v10, %v1526_v43  ;;  %v3387_v20 = vadd.f32 %v1439_v1, %v1382_v36  ;;  %v1749_v48 = vmul.f32 0.5, %v1693_v18 }
 0x29d   : > { %v2422_v6 = vpop.eup %2421  ;;  %v1583_v14 = vpack.c.bf16 %v1541_v56, %v1527_v26  ;;  %v1554_v25 = vmul.f32 0.5, %v3379_v60  ;;  %v3390_v28 = vadd.f32 %v1443_v61, %v1383_v39  ;;  %v1763_v38 = vmul.f32 0.5, %v1707_v22  ;;  %v1858_v26 = vld [vmem:[%s2825_s12 + $0x40] sm:$0xff] }
 0x29e   : > { %v1662_v52 = vunpack.c.l.bf16 %v2422_v6  ;;  %v1676_v44 = vunpack.c.h.bf16 %v2422_v6  ;;  %2429 = vtanh.bf16 %v1582_v33  ;;  %v1568_v62 = vmul.f32 0.5, %v3387_v20 }
 0x29f   : > { %2431 = vtanh.bf16 %v1583_v14  ;;  %v1555_v31 = vmul.f32 0.5, %v3384_v27  ;;  %v1569_v17 = vmul.f32 0.5, %v3390_v28  ;;  %v1888_v1 = vadd.f32 %v1816_v19, %v1802_v47 }
 0x2a0   : > { %v1718_v51 = vadd.f32 1.0, %v1662_v52  ;;  %v1732_v4 = vadd.f32 1.0, %v1676_v44  ;;  %v1596_v9 = vpack.c.bf16 %v1568_v62, %v1554_v25  ;;  %v1803_v40 = vmul.f32 %v1747_v58, %v3226_v63 }
 0x2a1   : > { %v1817_v61 = vmul.f32 %v1761_v21, %v3260_v16  ;;  %v1805_v7 = vmul.f32 %v1749_v48, %v3232_v41  ;;  %v1597_v34 = vpack.c.bf16 %v1569_v17, %v1555_v31  ;;  %v1819_v54 = vmul.f32 %v1763_v38, %v3263_v37  ;;  %v1860_v38 = vld [vmem:[%s2825_s12 + $0x50] sm:$0xff] }
 0x2a2   : > { %v2424_v50 = vpop.eup %2423  ;;  %v1774_v24 = vmul.f32 0.5, %v1718_v51  ;;  %v1788_v55 = vmul.f32 0.5, %v1732_v4  ;;  %2433 = vtanh.bf16 %v1596_v9 }
 0x2a3   : > { %v2426_v30 = vpop.eup %2425  ;;  %v1664_v32 = vunpack.c.l.bf16 %v2424_v50  ;;  %v1678_v42 = vunpack.c.h.bf16 %v2424_v50  ;;  %2435 = vtanh.bf16 %v1597_v34  ;;  %v1891_v33 = vadd.f32 %v1817_v61, %v1803_v40  ;;  %v1861_v61 = vld [vmem:[%s2825_s12 + $0x58] sm:$0xff] }
 0x2a4   : > { %v2428_v45 = vpop.eup %2427  ;;  %v1663_v47 = vunpack.c.l.bf16 %v2426_v30  ;;  %v1677_v19 = vunpack.c.h.bf16 %v2426_v30  ;;  %v1830_v57 = vmul.f32 %v1774_v24, %v3291_v3  ;;  %v1844_v63 = vmul.f32 %v1788_v55, %v3308_v29 }
 0x2a5   : > { %v1720_v16 = vadd.f32 1.0, %v1664_v32  ;;  %v1734_v23 = vadd.f32 1.0, %v1678_v42  ;;  %v1665_v22 = vunpack.c.l.bf16 %v2428_v45  ;;  %v1679_v0 = vunpack.c.h.bf16 %v2428_v45 }
 0x2a6   : > { %v1719_v41 = vadd.f32 1.0, %v1663_v47  ;;  %v1733_v18 = vadd.f32 1.0, %v1677_v19  ;;  %v1889_v43 = vadd.f32 %v1888_v1, %v1830_v57  ;;  %v1894_v3 = vadd.f32 %v3365_v8, %v3362_v53  ;;  %v1859_v1 = vld [vmem:[%s2825_s12 + $0x48] sm:$0xff] }
 0x2a7   : > { %v1776_v10 = vmul.f32 0.5, %v1720_v16  ;;  %v1790_v36 = vmul.f32 0.5, %v1734_v23  ;;  %v1721_v39 = vadd.f32 1.0, %v1665_v22  ;;  %v1735_v58 = vadd.f32 1.0, %v1679_v0 }
 0x2a8   : > { %v1775_v37 = vmul.f32 0.5, %v1719_v41  ;;  %v1789_v56 = vmul.f32 0.5, %v1733_v18  ;;  %v1890_v29 = vadd.f32 %v1889_v43, %v1844_v63  ;;  %v1897_v62 = vadd.f32 %v1819_v54, %v1805_v7 }
 0x2a9   : > { %v1832_v21 = vmul.f32 %v1776_v10, %v3314_v12  ;;  %v1777_v48 = vmul.f32 0.5, %v1721_v39  ;;  %v1791_v14 = vmul.f32 0.5, %v1735_v58  ;;  %v1846_v52 = vmul.f32 %v1790_v36, %v3333_v11 }
 0x2aa   : > { %v1831_v6 = vmul.f32 %v1775_v37, %v3320_v5  ;;  %v1914_v25 = vadd.f32 %v1890_v29, %v1858_v26  ;;  %v1845_v31 = vmul.f32 %v1789_v56, %v3336_v2 }
 0x2ab   : > { %v1895_v44 = vadd.f32 %v1894_v3, %v1832_v21  ;;  %v1833_v8 = vmul.f32 %v1777_v48, %v3330_v59  ;;  %v1847_v5 = vmul.f32 %v1791_v14, %v3339_v13 }
 0x2ac   : > { %v1892_v53 = vadd.f32 %v1891_v33, %v1831_v6  ;;  %v2430_v17 = vpop.eup %2429  ;;  %1928 = vst [vmem:[%s2825_s12 + $0x40] sm:$0xff] %v1914_v25  ;;  %v1862_v6 = vld [vmem:[%s2825_s12 + $0x60] sm:$0xff] }
 0x2ad   : > { %v1896_v12 = vadd.f32 %v1895_v44, %v1846_v52  ;;  %v2432_v51 = vpop.eup %2431  ;;  %v1898_v11 = vadd.f32 %v1897_v62, %v1833_v8  ;;  %v1638_v9 = vunpack.c.l.bf16 %v2430_v17  ;;  %v1652_v50 = vunpack.c.h.bf16 %v2430_v17  ;;  %v1863_v52 = vld [vmem:[%s2825_s12 + $0x68] sm:$0xff] }
 0x2ae   : > { %v1893_v4 = vadd.f32 %v1892_v53, %v1845_v31  ;;  %v1639_v7 = vunpack.c.l.bf16 %v2432_v51  ;;  %v1653_v2 = vunpack.c.h.bf16 %v2432_v51 }
 0x2af   : > { %v1916_v40 = vadd.f32 %v1896_v12, %v1860_v38  ;;  %v1899_v59 = vadd.f32 %v1898_v11, %v1847_v5  ;;  %v1694_v30 = vadd.f32 1.0, %v1638_v9  ;;  %v1708_v24 = vadd.f32 1.0, %v1652_v50 }
 0x2b0   : > { %v1915_v34 = vadd.f32 %v1893_v4, %v1859_v1  ;;  %v1695_v55 = vadd.f32 1.0, %v1639_v7  ;;  %v1709_v32 = vadd.f32 1.0, %v1653_v2  ;;  %v2434_v42 = vpop.eup %2433 }
 0x2b1   : > { %1930 = vst [vmem:[%s2825_s12 + $0x50] sm:$0xff] %v1916_v40  ;;  %v1917_v13 = vadd.f32 %v1899_v59, %v1861_v61  ;;  %v1750_v45 = vmul.f32 0.5, %v1694_v30  ;;  %v1764_v54 = vmul.f32 0.5, %v1708_v24  ;;  %v1666_v47 = vunpack.c.l.bf16 %v2434_v42  ;;  %v2436_v16 = vpop.eup %2435 }
 0x2b2   : > { %1929 = vst [vmem:[%s2825_s12 + $0x48] sm:$0xff] %v1915_v34  ;;  %v1680_v19 = vunpack.c.h.bf16 %v2434_v42  ;;  %v1751_v57 = vmul.f32 0.5, %v1695_v55  ;;  %v1765_v63 = vmul.f32 0.5, %v1709_v32  ;;  %v1667_v0 = vunpack.c.l.bf16 %v2436_v16 }
 0x2b3   : > { %1931 = vst [vmem:[%s2825_s12 + $0x58] sm:$0xff] %v1917_v13  ;;  %v1806_v23 = vmul.f32 %v1750_v45, %v3357_v15  ;;  %v1820_v41 = vmul.f32 %v1764_v54, %v3371_v35  ;;  %v1722_v18 = vadd.f32 1.0, %v1666_v47  ;;  %v1681_v43 = vunpack.c.h.bf16 %v2436_v16 }
 0x2b4   : > { %v1736_v22 = vadd.f32 1.0, %v1680_v19  ;;  %v1807_v26 = vmul.f32 %v1751_v57, %v3367_v49  ;;  %v1821_v37 = vmul.f32 %v1765_v63, %v3374_v46  ;;  %v1723_v56 = vadd.f32 1.0, %v1667_v0 }
 0x2b5   : > { %v1778_v10 = vmul.f32 0.5, %v1722_v18  ;;  %v1737_v39 = vadd.f32 1.0, %v1681_v43  ;;  %v1900_v58 = vadd.f32 %v1820_v41, %v1806_v23 }
 0x2b6   : > { %v1792_v36 = vmul.f32 0.5, %v1736_v22  ;;  %v1779_v35 = vmul.f32 0.5, %v1723_v56  ;;  %v1903_v33 = vadd.f32 %v1821_v37, %v1807_v26 }
 0x2b7   : > { %v1834_v15 = vmul.f32 %v1778_v10, %v3379_v60  ;;  %v1793_v3 = vmul.f32 0.5, %v1737_v39 }
 0x2b8   : > { %v1848_v29 = vmul.f32 %v1792_v36, %v3387_v20  ;;  %v1835_v48 = vmul.f32 %v1779_v35, %v3384_v27 }
 0x2b9   : > { %v1901_v21 = vadd.f32 %v1900_v58, %v1834_v15  ;;  %v1849_v46 = vmul.f32 %v1793_v3, %v3390_v28 }
 0x2ba   : > { %v1904_v14 = vadd.f32 %v1903_v33, %v1835_v48 }
 0x2bb   : > { %v1902_v49 = vadd.f32 %v1901_v21, %v1848_v29 }
 0x2bc   : > { %v1905_v44 = vadd.f32 %v1904_v14, %v1849_v46 }
 0x2bd   : > { %v1918_v25 = vadd.f32 %v1902_v49, %v1862_v6 }
 0x2be   : > { %v1919_v62 = vadd.f32 %v1905_v44, %v1863_v52 }
 0x2bf   : > { %1932 = vst [vmem:[%s2825_s12 + $0x60] sm:$0xff] %v1918_v25 }
 0x2c0   : > { %1933 = vst [vmem:[%s2825_s12 + $0x68] sm:$0xff] %v1919_v62 }
 0x2c1 PF: > { %s21_s28 = sadd.s32 1, %s2647_s28   ;;  %s3518_s24 = smov %s2639_s26 }
 0x2c2   : > { %p18_p4 = scmp.ge.s32.totalorder %s21_s28, 6   ;;  %s3519_s25 = smov %s2643_s27 }
 0x2c3   : > { %s3520_s26 = smov %s3523_s29  ;;  %s3521_s27 = smov %s3527_s30 }
 0x2c4   :  { %20 = sbr.rel (!%p18_p4) target bundleno = 6 (0x6), region = 107 }
 0x2c9   :  { %1955 = vsyncpa [#allocation3], 1 }
 0x2ca   :  { %1957 = vsyncpa [#allocation3 + $0x1], 1 }
 0x2cb   :  { %1958 = vsyncpa [#allocation5], 1 }
 0x2cc   :  { %1959 = vsyncpa [#allocation8], 1 }
 0x2cd   :  { %1960 = vsyncpa [#allocation11], 1 }

</bundles_post_ra>
